<compile_context>
chip_gen: v7x
topology: tpu7x:2x2x1
jax: 0.10.0
libtpu: 0.0.40
codegen_flags: <defaults>
</compile_context>

<pallas_src>
import functools

import jax
import jax.numpy as jnp
from jax import lax
from jax.experimental import pallas as pl
from jax.experimental.pallas import tpu as pltpu

_LANE = 128
_SUBLANE = 8
_MAX_TILE = 16384       # per-grid-step row cap (review: 4k-16k rows per step)
_CHUNK_ROWS = 1024      # in-kernel sub-chunk rows (keeps f32 temps <~1 MiB)


def _round_up(n, m):
    return ((n + m - 1) // m) * m


def _vmem_capacity_bytes():
    """Physical VMEM per TensorCore (generation aware); conservative default."""
    try:
        info = pltpu.get_tpu_info()
        cap = int(getattr(info, "vmem_capacity_bytes", 0))
        if cap > 0:
            return cap
    except Exception:
        pass
    return 64 << 20   # v7x-sized fallback: safe on every generation


def _tensorcores_per_chip():
    """TensorCores a single Pallas 'parallel' grid axis can span."""
    try:
        kind = (jax.devices()[0].device_kind or "").lower().replace(" ", "")
    except Exception:
        return 1
    for tag in ("v7", "7x", "v4", "v5p"):   # 2-TC chips exposed as one device
        if tag in kind:
            return 2
    return 1


def prepare_params(params, *, compute_dtype=jnp.bfloat16):
    """Prepare the torch-MLP parameters for the kernel.

    Call ONCE and reuse the result for every forward (review: padding/casting
    used to be redone per call).  Hidden dims are zero-padded to 128 lanes
    (exact: relu(0)=0 and zero rows/cols contribute nothing), matmul weights
    are cast to `compute_dtype`, biases stay f32, and a 1-column head is also
    stored as an f32 (1, H2p) row for the VPU/XLU head path.
    Use compute_dtype=jnp.float32 for exact parity with the f32 torch module.
    """
    w1, b1 = params["w1"], params["b1"]
    w2, b2 = params["w2"], params["b2"]
    w3, b3 = params["w3"], params["b3"]
    d_in, h1 = w1.shape
    h2 = w2.shape[1]
    d_out = w3.shape[1]
    h1p = _round_up(h1, _LANE)
    h2p = _round_up(h2, _LANE)

    def pad_to(a, shape):
        return jnp.pad(a, [(0, t - s) for s, t in zip(a.shape, shape)])

    return {
        "w1": pad_to(w1, (d_in, h1p)).astype(compute_dtype),
        "b1": pad_to(b1.reshape(1, h1), (1, h1p)).astype(jnp.float32),
        "w2": pad_to(w2, (h1p, h2p)).astype(compute_dtype),
        "b2": pad_to(b2.reshape(1, h2), (1, h2p)).astype(jnp.float32),
        "w3_col": pad_to(w3, (h2p, d_out)).astype(compute_dtype),
        "w3_row": (pad_to(w3, (h2p, 1)).T.astype(jnp.float32)
                   if d_out == 1 else None),
        "b3": b3.reshape(1, d_out).astype(jnp.float32),
        "dims": (int(d_in), int(h1p), int(h2p), int(d_out)),
        "compute_dtype": compute_dtype,
    }


def _choose_batch_tile(B, requested, row_bytes, act_budget_bytes, min_steps):
    """Pick the per-grid-step row count.

    Honors `requested` when it divides B.  Otherwise picks the largest tile
    (<= _MAX_TILE, within the activation VMEM budget) that divides B, prefers
    128-multiples (lane-dense output tiles), and -- on 2-TC chips -- prefers a
    step count that is a multiple of `min_steps`.
    """
    if requested is not None:
        r = int(requested)
        if 0 < r <= B and B % r == 0:
            return r
        return B   # unusable request: single tile (block dim == array dim)
    cap = int(min(B, _MAX_TILE, max(_LANE, act_budget_bytes // max(row_bytes, 1))))
    if B % _LANE != 0:
        if B % _SUBLANE == 0 and B > cap:
            t = (min(cap, B) // _SUBLANE) * _SUBLANE
            while t >= _SUBLANE:
                if B % t == 0:
                    return t
                t -= _SUBLANE
        return B
    if B <= cap and min_steps <= 1:
        return B
    upper = max(_LANE, min(cap, B // max(min_steps, 1)))
    upper = (upper // _LANE) * _LANE
    best = None
    t = upper
    while t >= _LANE:
        if B % t == 0:
            if best is None:
                best = t
            if min_steps <= 1 or (B // t) % min_steps == 0:
                return t
        t -= _LANE
    return best if best is not None else B


def _choose_chunk(tb, align):
    """In-kernel sub-chunk rows: largest `align`-multiple divisor of tb that is
    <= _CHUNK_ROWS (keeps the f32 (chunk, 128) intermediates small)."""
    if tb <= _CHUNK_ROWS:
        return tb
    if tb % align != 0:
        return tb
    c = max(align, (_CHUNK_ROWS // align) * align)
    while tb % c != 0:
        c -= align
    return c


def _resident_spec(arr):
    """Full-array block + constant index map => stays resident in VMEM.
    Single-buffered (review): constant blocks are never re-fetched, so the
    second pipeline buffer is pure VMEM waste."""
    nd = arr.ndim
    index_map = lambda *args, _nd=nd: (0,) * _nd
    try:
        return pl.BlockSpec(arr.shape, index_map, pipeline_mode=pl.Buffered(1))
    except (TypeError, ValueError):   # older jax without pipeline_mode
        return pl.BlockSpec(arr.shape, index_map)


def _mlp_kernel(x_ref, w1_ref, b1_ref, w2_ref, b2_ref, w3_ref, b3_ref, o_ref,
                *, lane_dense, compute_dtype, chunk, n_chunks):
    """relu(relu(x@W1+b1)@W2+b2) -> head, for one batch tile.

    The tile is processed in `n_chunks` sub-chunks of `chunk` rows.  Matmuls
    run on the MXU in `compute_dtype` with f32 accumulation; bias adds / ReLUs
    are f32 on the VPU.  With `lane_dense` (output_dim == 1) the head is a VPU
    multiply + XLU lane reduction and the (rows, 1) column is transposed to a
    lane-dense (1, rows) row before the store (unmasked vst)."""
    w1 = w1_ref[...]
    b1 = b1_ref[...]
    w2 = w2_ref[...]
    b2 = b2_ref[...]
    w3 = w3_ref[...]
    b3 = b3_ref[...]

    def one_chunk(row0):
        x = x_ref[pl.ds(row0, chunk), :].astype(compute_dtype)
        h1 = jnp.dot(x, w1, preferred_element_type=jnp.float32)
        h1 = jnp.maximum(h1 + b1, 0.0)                               # f32 VPU
        h2 = jnp.dot(h1.astype(compute_dtype), w2,
                     preferred_element_type=jnp.float32)
        h2 = jnp.maximum(h2 + b2, 0.0)                               # f32 VPU
        if lane_dense:
            col = jnp.sum(h2 * w3, axis=-1, keepdims=True)           # (chunk, 1)
            row = col.T + b3                                         # (1, chunk)
            o_ref[:, pl.ds(row0, chunk)] = row.astype(o_ref.dtype)
        else:
            out = jnp.dot(h2.astype(compute_dtype), w3,
                          preferred_element_type=jnp.float32) + b3
            o_ref[pl.ds(row0, chunk), :] = out.astype(o_ref.dtype)

    if n_chunks == 1:
        one_chunk(0)
    else:
        def body(c, carry):
            one_chunk(pl.multiple_of(c * chunk, chunk))
            return carry
        lax.fori_loop(0, n_chunks, body, 0)


def _pallas_forward(x, p, *, tb, lane_dense, vmem_ceiling):
    B, d_in = x.shape
    _, h1p, h2p, d_out = p["dims"]
    compute_dtype = p["compute_dtype"]
    n_steps = B // tb
    chunk = _choose_chunk(tb, _LANE if lane_dense else _SUBLANE)
    n_chunks = tb // chunk

    if lane_dense:
        w3, b3 = p["w3_row"], p["b3"]
        out_shape = jax.ShapeDtypeStruct((1, B), jnp.float32)
        out_spec = pl.BlockSpec((1, tb), lambda i: (0, i))
    else:
        w3, b3 = p["w3_col"], p["b3"]
        out_shape = jax.ShapeDtypeStruct((B, d_out), jnp.float32)
        out_spec = pl.BlockSpec((tb, d_out), lambda i: (i, 0))

    weights = (p["w1"], p["b1"], p["w2"], p["b2"], w3, b3)
    in_specs = [pl.BlockSpec((tb, d_in), lambda i: (i, 0))]
    in_specs += [_resident_spec(a) for a in weights]

    param_bytes = sum(int(a.size) * a.dtype.itemsize for a in weights)
    flops = 2 * B * (d_in * h1p + h1p * h2p + h2p * d_out)
    bytes_accessed = (B * d_in * x.dtype.itemsize + B * d_out * 4 + param_bytes)

    vmem_est = (2 * tb * d_in * x.dtype.itemsize     # double-buffered x tiles
                + 2 * tb * max(d_out, 1) * 4         # double-buffered out tiles
                + param_bytes                        # single-buffered weights
                + chunk * (h1p + h2p) * 4            # f32 per-chunk temps
                + (2 << 20))                         # slack for compiler temps
    vmem_limit = int(min(max(vmem_ceiling, 32 << 20), max(32 << 20, 2 * vmem_est)))

    kernel = functools.partial(_mlp_kernel, lane_dense=lane_dense,
                               compute_dtype=compute_dtype,
                               chunk=chunk, n_chunks=n_chunks)

    return pl.pallas_call(
        kernel,
        out_shape=out_shape,
        grid_spec=pltpu.PrefetchScalarGridSpec(
            num_scalar_prefetch=0,
            grid=(n_steps,),
            in_specs=in_specs,
            out_specs=out_spec,
        ),
        compiler_params=pltpu.CompilerParams(
            dimension_semantics=("parallel",),   # batch tiles shard across TCs
            vmem_limit_bytes=vmem_limit,
        ),
        cost_estimate=pl.CostEstimate(
            flops=flops, transcendentals=0, bytes_accessed=bytes_accessed),
    )(x, *weights)


def vanilla_value_network_forward(x, prepared, *, batch_tile=None):
    """Fused MLP forward.

    x:        (B, input_dim) float32 (streamed as-is; cast in-kernel).
    prepared: output of prepare_params() -- prepare ONCE, reuse per call.
    batch_tile: optional per-grid-step rows; honored iff it divides B,
                otherwise the whole batch is processed as a single tile.
    Returns (B, output_dim) float32.
    """
    B, d_in = x.shape
    d_in_p, h1p, h2p, d_out = prepared["dims"]
    assert d_in == d_in_p, "input_dim mismatch vs prepared params"

    vmem_ceiling = (_vmem_capacity_bytes() * 3) // 4        # gen-aware headroom
    param_bytes = sum(int(a.size) * a.dtype.itemsize
                      for a in (prepared["w1"], prepared["b1"], prepared["w2"],
                                prepared["b2"], prepared["w3_col"], prepared["b3"]))
    chunk_bytes = min(_CHUNK_ROWS, B) * (h1p + h2p) * 4
    row_bytes = 2 * d_in * x.dtype.itemsize + 2 * 4 * max(d_out, 1)
    act_budget = max(1 << 20, vmem_ceiling - param_bytes - chunk_bytes - (4 << 20))
    min_steps = 2 if (_tensorcores_per_chip() >= 2 and B >= 2 * _LANE) else 1
    tb = _choose_batch_tile(B, batch_tile, row_bytes, act_budget, min_steps)

    lane_dense_ok = (d_out == 1 and prepared["w3_row"] is not None
                     and (tb % _LANE == 0 or (tb == B and tb <= _CHUNK_ROWS)))
    attempts = [True, False] if lane_dense_ok else [False]

    err = None
    for lane_dense in attempts:
        try:
            out = _pallas_forward(x, prepared, tb=tb, lane_dense=lane_dense,
                                  vmem_ceiling=vmem_ceiling)
        except Exception as e:   # lowering fallback (e.g. unsupported relayout)
            err = e
            continue
        return out.reshape(B, d_out)
    raise err


def init_params(key, input_dim, hidden_dims, output_dim):
    """Deterministic xavier-normal-style init (matches xavier_init shapes).
    Weights stored as (in, out) == torch weight (out, in) transposed."""
    dims = [input_dim] + list(hidden_dims) + [output_dim]
    params = {}
    keys = jax.random.split(key, 2 * (len(dims) - 1))
    for idx, (fan_in, fan_out) in enumerate(zip(dims[:-1], dims[1:]), start=1):
        std = (2.0 / (fan_in + fan_out)) ** 0.5
        params[f"w{idx}"] = std * jax.random.normal(
            keys[2 * idx - 2], (fan_in, fan_out), dtype=jnp.float32)
        params[f"b{idx}"] = 0.1 * jax.random.normal(
            keys[2 * idx - 1], (1, fan_out), dtype=jnp.float32)
    return params


def reference_forward(x, params):
    """Full-f32 reference == the torch module's math."""
    h = jnp.maximum(x @ params["w1"] + params["b1"], 0.0)
    h = jnp.maximum(h @ params["w2"] + params["b2"], 0.0)
    return h @ params["w3"] + params["b3"]


def reference_forward_kernel_math(x, prepared, *, lane_dense_head=True):
    """Reference mirroring the kernel's compute path (compute_dtype operands,
    f32 accumulation / elementwise, padded weights, chosen head form)."""
    cd = prepared["compute_dtype"]
    h1 = jnp.dot(x.astype(cd), prepared["w1"], preferred_element_type=jnp.float32)
    h1 = jnp.maximum(h1 + prepared["b1"], 0.0)
    h2 = jnp.dot(h1.astype(cd), prepared["w2"], preferred_element_type=jnp.float32)
    h2 = jnp.maximum(h2 + prepared["b2"], 0.0)
    d_out = prepared["dims"][3]
    if lane_dense_head and d_out == 1:
        return jnp.sum(h2 * prepared["w3_row"], axis=-1, keepdims=True) + prepared["b3"]
    return jnp.dot(h2.astype(cd), prepared["w3_col"],
                   preferred_element_type=jnp.float32) + prepared["b3"]


if __name__ == "__main__":
    key = jax.random.PRNGKey(0)
    k_x, k_p = jax.random.split(key)

    batch, input_dim = 256, 16
    hidden_dims = [32, 32]
    output_dim = 1

    x = jax.random.normal(k_x, (batch, input_dim), dtype=jnp.float32)
    params = init_params(k_p, input_dim, hidden_dims, output_dim)
    prepared = prepare_params(params)          # hoisted: prepare once, reuse

    # Default (budget-driven) tiling.
    out = vanilla_value_network_forward(x, prepared)
    # Explicit 128-row tiles: multi-step grid, lane-dense output path.
    out_t128 = vanilla_value_network_forward(x, prepared, batch_tile=128)
    # Explicit 64-row tiles: non-128-aligned => column-output fallback path.
    out_t64 = vanilla_value_network_forward(x, prepared, batch_tile=64)
    jax.block_until_ready((out, out_t128, out_t64))

    assert out.shape == (batch, output_dim)
    assert out_t128.shape == (batch, output_dim)
    assert out_t64.shape == (batch, output_dim)

    ref_row = reference_forward_kernel_math(x, prepared, lane_dense_head=True)
    ref_col = reference_forward_kernel_math(x, prepared, lane_dense_head=False)

    def close_to_either(y):
        return (bool(jnp.allclose(y, ref_row, atol=1e-4, rtol=1e-4)) or
                bool(jnp.allclose(y, ref_col, atol=1e-4, rtol=1e-4)))

    assert close_to_either(out), "kernel mismatch vs matched-precision reference"
    assert close_to_either(out_t128), "tiled kernel mismatch vs matched reference"
    assert close_to_either(out_t64), "fallback-path kernel mismatch vs matched reference"

    ref_f32 = reference_forward(x, params)
    for y in (out, out_t128, out_t64):
        assert jnp.allclose(y, ref_f32, atol=1e-1, rtol=1e-1), \
            "kernel diverged grossly from f32 module reference"

    print("KERNEL_OK")
</pallas_src>

<mosaic_0001>
module attributes {stable_mosaic.version = 11 : i64} {
  func.func @_mlp_kernel(%arg0: i32, %arg1: memref<256x16xf32, #tpu.memory_space<vmem>>, %arg2: memref<16x128xbf16, #tpu.memory_space<vmem>>, %arg3: memref<1x128xf32, #tpu.memory_space<vmem>>, %arg4: memref<128x128xbf16, #tpu.memory_space<vmem>>, %arg5: memref<1x128xf32, #tpu.memory_space<vmem>>, %arg6: memref<1x128xf32, #tpu.memory_space<vmem>>, %arg7: memref<1x1xf32, #tpu.memory_space<vmem>>, %arg8: memref<1x256xf32, #tpu.memory_space<vmem>>) attributes {dimension_semantics = [#tpu.dimension_semantics<parallel>], iteration_bounds = array<i64: 1>, scalar_prefetch = 0 : i64, scratch_operands = 0 : i64, tpu.core_type = #tpu.core_type<tc>, window_params = [{transform_indices = @transform_0, window_bounds = array<i64: 256, 16>}, {pipeline_mode = #tpu.pipeline_mode<synchronous>, transform_indices = @transform_1, window_bounds = array<i64: 16, 128>}, {pipeline_mode = #tpu.pipeline_mode<synchronous>, transform_indices = @transform_2, window_bounds = array<i64: 1, 128>}, {pipeline_mode = #tpu.pipeline_mode<synchronous>, transform_indices = @transform_3, window_bounds = array<i64: 128, 128>}, {pipeline_mode = #tpu.pipeline_mode<synchronous>, transform_indices = @transform_4, window_bounds = array<i64: 1, 128>}, {pipeline_mode = #tpu.pipeline_mode<synchronous>, transform_indices = @transform_5, window_bounds = array<i64: 1, 128>}, {pipeline_mode = #tpu.pipeline_mode<synchronous>, transform_indices = @transform_6, window_bounds = array<i64: 1, 1>}, {transform_indices = @transform_7, window_bounds = array<i64: 1, 256>}]} {
    %c0 = arith.constant 0 : index
    %c0_0 = arith.constant 0 : index
    %0 = vector.load %arg2[%c0, %c0_0] : memref<16x128xbf16, #tpu.memory_space<vmem>>, vector<16x128xbf16>
    %c0_1 = arith.constant 0 : index
    %c0_2 = arith.constant 0 : index
    %1 = vector.load %arg3[%c0_1, %c0_2] : memref<1x128xf32, #tpu.memory_space<vmem>>, vector<1x128xf32>
    %c0_3 = arith.constant 0 : index
    %c0_4 = arith.constant 0 : index
    %2 = vector.load %arg4[%c0_3, %c0_4] : memref<128x128xbf16, #tpu.memory_space<vmem>>, vector<128x128xbf16>
    %c0_5 = arith.constant 0 : index
    %c0_6 = arith.constant 0 : index
    %3 = vector.load %arg5[%c0_5, %c0_6] : memref<1x128xf32, #tpu.memory_space<vmem>>, vector<1x128xf32>
    %c0_7 = arith.constant 0 : index
    %c0_8 = arith.constant 0 : index
    %4 = vector.load %arg6[%c0_7, %c0_8] : memref<1x128xf32, #tpu.memory_space<vmem>>, vector<1x128xf32>
    %c0_9 = arith.constant 0 : index
    %c0_10 = arith.constant 0 : index
    %5 = vector.load %arg7[%c0_9, %c0_10] : memref<1x1xf32, #tpu.memory_space<vmem>>, vector<1x1xf32>
    %c0_11 = arith.constant 0 : index
    %c0_12 = arith.constant 0 : index
    %6 = vector.load %arg1[%c0_11, %c0_12] : memref<256x16xf32, #tpu.memory_space<vmem>>, vector<256x16xf32>
    %7 = arith.truncf %6 : vector<256x16xf32> to vector<256x16xbf16>
    %cst = arith.constant dense<0.000000e+00> : vector<256x128xf32>
    %8 = tpu.matmul %7, %0, %cst {dimension_numbers = #tpu.dot_dimension_numbers<[1], [0], [0], [1], [0, 0, 1, 1], [], []>} : vector<256x16xbf16>, vector<16x128xbf16>, vector<256x128xf32> -> vector<256x128xf32>
    %9 = vector.broadcast %1 : vector<1x128xf32> to vector<256x128xf32>
    %10 = arith.addf %8, %9 : vector<256x128xf32>
    %cst_13 = arith.constant 0.000000e+00 : f32
    %11 = vector.broadcast %cst_13 : f32 to vector<256x128xf32>
    %12 = arith.maximumf %10, %11 : vector<256x128xf32>
    %13 = arith.truncf %12 : vector<256x128xf32> to vector<256x128xbf16>
    %cst_14 = arith.constant dense<0.000000e+00> : vector<256x128xf32>
    %14 = tpu.matmul %13, %2, %cst_14 {dimension_numbers = #tpu.dot_dimension_numbers<[1], [0], [0], [1], [0, 0, 1, 1], [], []>} : vector<256x128xbf16>, vector<128x128xbf16>, vector<256x128xf32> -> vector<256x128xf32>
    %15 = vector.broadcast %3 : vector<1x128xf32> to vector<256x128xf32>
    %16 = arith.addf %14, %15 : vector<256x128xf32>
    %cst_15 = arith.constant 0.000000e+00 : f32
    %17 = vector.broadcast %cst_15 : f32 to vector<256x128xf32>
    %18 = arith.maximumf %16, %17 : vector<256x128xf32>
    %19 = vector.broadcast %4 : vector<1x128xf32> to vector<256x128xf32>
    %20 = arith.mulf %18, %19 : vector<256x128xf32>
    %cst_16 = arith.constant dense<0.000000e+00> : vector<256xf32>
    %21 = vector.multi_reduction <add>, %20, %cst_16 [1] : vector<256x128xf32> to vector<256xf32>
    %22 = vector.shape_cast %21 : vector<256xf32> to vector<256x1xf32>
    %23 = tpu.transpose %22, [1, 0] : vector<256x1xf32> -> vector<1x256xf32>
    %24 = vector.broadcast %5 : vector<1x1xf32> to vector<1x256xf32>
    %25 = arith.addf %23, %24 : vector<1x256xf32>
    %c0_17 = arith.constant 0 : index
    %c0_18 = arith.constant 0 : index
    %26 = vector.load %arg8[%c0_17, %c0_18] : memref<1x256xf32, #tpu.memory_space<vmem>>, vector<1x256xf32>
    tpu.vector_store %arg8[%c0_17, %c0_18], %25 {strides = array<i32>} : memref<1x256xf32, #tpu.memory_space<vmem>>, vector<1x256xf32>,
    return
  }
  func.func @transform_0(%arg0: i32) -> (i32, i32) {
    %c0_i32 = arith.constant 0 : i32
    %c0_i32_0 = arith.constant 0 : i32
    return %arg0, %c0_i32 : i32, i32
  }
  func.func @transform_1(%arg0: i32) -> (i32, i32) {
    %c0_i32 = arith.constant 0 : i32
    %c0_i32_0 = arith.constant 0 : i32
    %c0_i32_1 = arith.constant 0 : i32
    return %c0_i32, %c0_i32_0 : i32, i32
  }
  func.func @transform_2(%arg0: i32) -> (i32, i32) {
    %c0_i32 = arith.constant 0 : i32
    %c0_i32_0 = arith.constant 0 : i32
    %c0_i32_1 = arith.constant 0 : i32
    return %c0_i32, %c0_i32_0 : i32, i32
  }
  func.func @transform_3(%arg0: i32) -> (i32, i32) {
    %c0_i32 = arith.constant 0 : i32
    %c0_i32_0 = arith.constant 0 : i32
    %c0_i32_1 = arith.constant 0 : i32
    return %c0_i32, %c0_i32_0 : i32, i32
  }
  func.func @transform_4(%arg0: i32) -> (i32, i32) {
    %c0_i32 = arith.constant 0 : i32
    %c0_i32_0 = arith.constant 0 : i32
    %c0_i32_1 = arith.constant 0 : i32
    return %c0_i32, %c0_i32_0 : i32, i32
  }
  func.func @transform_5(%arg0: i32) -> (i32, i32) {
    %c0_i32 = arith.constant 0 : i32
    %c0_i32_0 = arith.constant 0 : i32
    %c0_i32_1 = arith.constant 0 : i32
    return %c0_i32, %c0_i32_0 : i32, i32
  }
  func.func @transform_6(%arg0: i32) -> (i32, i32) {
    %c0_i32 = arith.constant 0 : i32
    %c0_i32_0 = arith.constant 0 : i32
    %c0_i32_1 = arith.constant 0 : i32
    return %c0_i32, %c0_i32_0 : i32, i32
  }
  func.func @transform_7(%arg0: i32) -> (i32, i32) {
    %c0_i32 = arith.constant 0 : i32
    %c0_i32_0 = arith.constant 0 : i32
    return %c0_i32, %arg0 : i32, i32
  }
}

module attributes {stable_mosaic.version = 11 : i64} {
  func.func @_mlp_kernel(%arg0: i32, %arg1: memref<256x16xf32, #tpu.memory_space<vmem>>, %arg2: memref<16x128xbf16, #tpu.memory_space<vmem>>, %arg3: memref<1x128xf32, #tpu.memory_space<vmem>>, %arg4: memref<128x128xbf16, #tpu.memory_space<vmem>>, %arg5: memref<1x128xf32, #tpu.memory_space<vmem>>, %arg6: memref<128x1xbf16, #tpu.memory_space<vmem>>, %arg7: memref<1x1xf32, #tpu.memory_space<vmem>>, %arg8: memref<256x1xf32, #tpu.memory_space<vmem>>) attributes {dimension_semantics = [#tpu.dimension_semantics<parallel>], iteration_bounds = array<i64: 1>, scalar_prefetch = 0 : i64, scratch_operands = 0 : i64, tpu.core_type = #tpu.core_type<tc>, window_params = [{transform_indices = @transform_0, window_bounds = array<i64: 256, 16>}, {pipeline_mode = #tpu.pipeline_mode<synchronous>, transform_indices = @transform_1, window_bounds = array<i64: 16, 128>}, {pipeline_mode = #tpu.pipeline_mode<synchronous>, transform_indices = @transform_2, window_bounds = array<i64: 1, 128>}, {pipeline_mode = #tpu.pipeline_mode<synchronous>, transform_indices = @transform_3, window_bounds = array<i64: 128, 128>}, {pipeline_mode = #tpu.pipeline_mode<synchronous>, transform_indices = @transform_4, window_bounds = array<i64: 1, 128>}, {pipeline_mode = #tpu.pipeline_mode<synchronous>, transform_indices = @transform_5, window_bounds = array<i64: 128, 1>}, {pipeline_mode = #tpu.pipeline_mode<synchronous>, transform_indices = @transform_6, window_bounds = array<i64: 1, 1>}, {transform_indices = @transform_7, window_bounds = array<i64: 256, 1>}]} {
    %c0 = arith.constant 0 : index
    %c0_0 = arith.constant 0 : index
    %0 = vector.load %arg2[%c0, %c0_0] : memref<16x128xbf16, #tpu.memory_space<vmem>>, vector<16x128xbf16>
    %c0_1 = arith.constant 0 : index
    %c0_2 = arith.constant 0 : index
    %1 = vector.load %arg3[%c0_1, %c0_2] : memref<1x128xf32, #tpu.memory_space<vmem>>, vector<1x128xf32>
    %c0_3 = arith.constant 0 : index
    %c0_4 = arith.constant 0 : index
    %2 = vector.load %arg4[%c0_3, %c0_4] : memref<128x128xbf16, #tpu.memory_space<vmem>>, vector<128x128xbf16>
    %c0_5 = arith.constant 0 : index
    %c0_6 = arith.constant 0 : index
    %3 = vector.load %arg5[%c0_5, %c0_6] : memref<1x128xf32, #tpu.memory_space<vmem>>, vector<1x128xf32>
    %c0_7 = arith.constant 0 : index
    %c0_8 = arith.constant 0 : index
    %4 = vector.load %arg6[%c0_7, %c0_8] : memref<128x1xbf16, #tpu.memory_space<vmem>>, vector<128x1xbf16>
    %c0_9 = arith.constant 0 : index
    %c0_10 = arith.constant 0 : index
    %5 = vector.load %arg7[%c0_9, %c0_10] : memref<1x1xf32, #tpu.memory_space<vmem>>, vector<1x1xf32>
    %c0_11 = arith.constant 0 : index
    %c0_12 = arith.constant 0 : index
    %6 = vector.load %arg1[%c0_11, %c0_12] : memref<256x16xf32, #tpu.memory_space<vmem>>, vector<256x16xf32>
    %7 = arith.truncf %6 : vector<256x16xf32> to vector<256x16xbf16>
    %cst = arith.constant dense<0.000000e+00> : vector<256x128xf32>
    %8 = tpu.matmul %7, %0, %cst {dimension_numbers = #tpu.dot_dimension_numbers<[1], [0], [0], [1], [0, 0, 1, 1], [], []>} : vector<256x16xbf16>, vector<16x128xbf16>, vector<256x128xf32> -> vector<256x128xf32>
    %9 = vector.broadcast %1 : vector<1x128xf32> to vector<256x128xf32>
    %10 = arith.addf %8, %9 : vector<256x128xf32>
    %cst_13 = arith.constant 0.000000e+00 : f32
    %11 = vector.broadcast %cst_13 : f32 to vector<256x128xf32>
    %12 = arith.maximumf %10, %11 : vector<256x128xf32>
    %13 = arith.truncf %12 : vector<256x128xf32> to vector<256x128xbf16>
    %cst_14 = arith.constant dense<0.000000e+00> : vector<256x128xf32>
    %14 = tpu.matmul %13, %2, %cst_14 {dimension_numbers = #tpu.dot_dimension_numbers<[1], [0], [0], [1], [0, 0, 1, 1], [], []>} : vector<256x128xbf16>, vector<128x128xbf16>, vector<256x128xf32> -> vector<256x128xf32>
    %15 = vector.broadcast %3 : vector<1x128xf32> to vector<256x128xf32>
    %16 = arith.addf %14, %15 : vector<256x128xf32>
    %cst_15 = arith.constant 0.000000e+00 : f32
    %17 = vector.broadcast %cst_15 : f32 to vector<256x128xf32>
    %18 = arith.maximumf %16, %17 : vector<256x128xf32>
    %19 = arith.truncf %18 : vector<256x128xf32> to vector<256x128xbf16>
    %cst_16 = arith.constant dense<0.000000e+00> : vector<256x1xf32>
    %20 = tpu.matmul %19, %4, %cst_16 {dimension_numbers = #tpu.dot_dimension_numbers<[1], [0], [0], [1], [0, 0, 1, 1], [], []>} : vector<256x128xbf16>, vector<128x1xbf16>, vector<256x1xf32> -> vector<256x1xf32>
    %21 = vector.broadcast %5 : vector<1x1xf32> to vector<256x1xf32>
    %22 = arith.addf %20, %21 : vector<256x1xf32>
    %c0_17 = arith.constant 0 : index
    %c0_18 = arith.constant 0 : index
    %23 = vector.load %arg8[%c0_17, %c0_18] : memref<256x1xf32, #tpu.memory_space<vmem>>, vector<256x1xf32>
    tpu.vector_store %arg8[%c0_17, %c0_18], %22 {strides = array<i32>} : memref<256x1xf32, #tpu.memory_space<vmem>>, vector<256x1xf32>,
    return
  }
  func.func @transform_0(%arg0: i32) -> (i32, i32) {
    %c0_i32 = arith.constant 0 : i32
    %c0_i32_0 = arith.constant 0 : i32
    return %arg0, %c0_i32 : i32, i32
  }
  func.func @transform_1(%arg0: i32) -> (i32, i32) {
    %c0_i32 = arith.constant 0 : i32
    %c0_i32_0 = arith.constant 0 : i32
    %c0_i32_1 = arith.constant 0 : i32
    return %c0_i32, %c0_i32_0 : i32, i32
  }
  func.func @transform_2(%arg0: i32) -> (i32, i32) {
    %c0_i32 = arith.constant 0 : i32
    %c0_i32_0 = arith.constant 0 : i32
    %c0_i32_1 = arith.constant 0 : i32
    return %c0_i32, %c0_i32_0 : i32, i32
  }
  func.func @transform_3(%arg0: i32) -> (i32, i32) {
    %c0_i32 = arith.constant 0 : i32
    %c0_i32_0 = arith.constant 0 : i32
    %c0_i32_1 = arith.constant 0 : i32
    return %c0_i32, %c0_i32_0 : i32, i32
  }
  func.func @transform_4(%arg0: i32) -> (i32, i32) {
    %c0_i32 = arith.constant 0 : i32
    %c0_i32_0 = arith.constant 0 : i32
    %c0_i32_1 = arith.constant 0 : i32
    return %c0_i32, %c0_i32_0 : i32, i32
  }
  func.func @transform_5(%arg0: i32) -> (i32, i32) {
    %c0_i32 = arith.constant 0 : i32
    %c0_i32_0 = arith.constant 0 : i32
    %c0_i32_1 = arith.constant 0 : i32
    return %c0_i32, %c0_i32_0 : i32, i32
  }
  func.func @transform_6(%arg0: i32) -> (i32, i32) {
    %c0_i32 = arith.constant 0 : i32
    %c0_i32_0 = arith.constant 0 : i32
    %c0_i32_1 = arith.constant 0 : i32
    return %c0_i32, %c0_i32_0 : i32, i32
  }
  func.func @transform_7(%arg0: i32) -> (i32, i32) {
    %c0_i32 = arith.constant 0 : i32
    %c0_i32_0 = arith.constant 0 : i32
    return %arg0, %c0_i32 : i32, i32
  }
}

</mosaic_0001>

<bundles_post_ra>
// kernel: tpu_custom_call.1
= control target key start
LH: loop header
LB: loop body
LE: loop exit
PB: predicated region body
PF: predicated region fallthrough
CT: control target
= control target key end

     0   :  { %s1349_s0 = inlined_call_operand.vmem [shape: f32[256,16], index: 0, kind: input, shape index: {}]   ;;  %s1350_s1 = inlined_call_operand.vmem [shape: bf16[16,128], index: 1, kind: input, shape index: {}]   ;;  %s1351_s2 = inlined_call_operand.vmem [shape: f32[1,128], index: 2, kind: input, shape index: {}]   ;;  %s1352_s3 = inlined_call_operand.vmem [shape: bf16[128,128], index: 3, kind: input, shape index: {}]   ;;  %s1353_s4 = inlined_call_operand.vmem [shape: f32[1,128], index: 4, kind: input, shape index: {}]   ;;  %s1354_s5 = inlined_call_operand.vmem [shape: f32[1,128], index: 5, kind: input, shape index: {}]   ;;  %s1355_s6 = inlined_call_operand.<no memory space> [shape: f32[1,1], index: 6, kind: input, shape index: {}]   ;;  %s1356_s7 = inlined_call_operand.hbm [shape: f32[1,256], index: 7, kind: output, shape index: {}]  }
   0x1   :  { %v12_v0 = vstv %s1355_s6 }
   0x2   :  { %13 = vst [vmem:[#allocation2] sm:$0x1] %v12_v0 }
   0x3   :  { %v1003_v1 = vld [vmem:[%s1350_s1] sm:$0xff]   ;;  %v53_v3 = vld [vmem:[%s1349_s0 + $0x8] sm:$0xff]  ;;  %vm112_vm0 = vcmask 130048   ;;  %v54_v4 = vld [vmem:[%s1349_s0 + $0x10] sm:$0xff] }
   0x4   :  { %v52_v2 = vld [vmem:[%s1349_s0] sm:$0xff]  ;;  %900 = vmatprep.subr.bf16.mxu0 %v1003_v1  ;;  %v55_v6 = vld [vmem:[%s1349_s0 + $0x18] sm:$0xff]  ;;  %v57_v8 = vld [vmem:[%s1349_s0 + $0x28] sm:$0xff] }
   0x5   :  { %v84_v5 = vpack.c.bf16 %v53_v3, %v52_v2  ;;  %v56_v7 = vld [vmem:[%s1349_s0 + $0x20] sm:$0xff]  ;;  %901 = vmatpush3.bf16.msra.mxu0 %v1003_v1  ;;  %v85_v9 = vpack.c.bf16 %v55_v6, %v54_v4  ;;  %v58_v11 = vld [vmem:[%s1349_s0 + $0x30] sm:$0xff]  ;;  %v59_v12 = vld [vmem:[%s1349_s0 + $0x38] sm:$0xff] }
   0x6   :  { %v86_v10 = vpack.c.bf16 %v57_v8, %v56_v7  ;;  %v60_v13 = vld [vmem:[%s1349_s0 + $0x40] sm:$0xff]  ;;  %v61_v14 = vld [vmem:[%s1349_s0 + $0x48] sm:$0xff]  ;;  %v87_v15 = vpack.c.bf16 %v59_v12, %v58_v11  ;;  %v62_v18 = vld [vmem:[%s1349_s0 + $0x50] sm:$0xff] }
   0x7   :  { %902 = vmatprep.mubr.msk.bf16.mxu0 %vm112_vm0, %v84_v5  ;;  %v88_v16 = vpack.c.bf16 %v61_v14, %v60_v13  ;;  %v1004_v17 = vld [vmem:[%s1352_s3] sm:$0xff]   ;;  %v63_v19 = vld [vmem:[%s1349_s0 + $0x58] sm:$0xff]  ;;  %v1005_v20 = vld [vmem:[%s1352_s3 + $0x8] sm:$0xff]  }
   0x8   :  { %903 = vmatmul.mubr.msk.bf16.vlgmr.msra.gmra.mrb[0].mxu0 %vm112_vm0, %v85_v9  ;;  %v64_v21 = vld [vmem:[%s1349_s0 + $0x60] sm:$0xff]  ;;  %934 = vmatprep.subr.bf16.mxu0 %v1004_v17  ;;  %v65_v22 = vld [vmem:[%s1349_s0 + $0x68] sm:$0xff]  ;;  %v1006_v23 = vld [vmem:[%s1352_s3 + $0x10] sm:$0xff]   ;;  %v89_v24 = vpack.c.bf16 %v63_v19, %v62_v18 }
   0x9   :  { %906 = vmatprep.mubr.msk.bf16.mxu0 %vm112_vm0, %v86_v10  ;;  %935 = vmatpush3.bf16.msra.mxu0 %v1004_v17  ;;  %v90_v25 = vpack.c.bf16 %v65_v22, %v64_v21 }
   0xa   :  { %936 = vmatprep.subr.bf16.mxu0 %v1005_v20  ;;  %982 = vmatprep.subr.bf16.mxu1 %v1004_v17 }
   0xb   :  { %990 = vmatpush3.bf16.msra.mxu1 %v1004_v17 }
   0xc   :  { %983 = vmatprep.subr.bf16.mxu1 %v1005_v20 }
   0xd   :  { %937 = vmatpush3.bf16.msra.mxu0 %v1005_v20 }
  0x10   :  { %907 = vmatmul.mubr.msk.bf16.gmra.mrb[4].mxu0 %vm112_vm0, %v87_v15 }
  0x11   :  { %910 = vmatprep.mubr.msk.bf16.mxu0 %vm112_vm0, %v88_v16 }
  0x12   :  { %14 = vsyncpa [#allocation4], 0  ;;  %938 = vmatprep.subr.bf16.mxu0 %v1006_v23  ;;  %v1007_v26 = vld [vmem:[%s1352_s3 + $0x18] sm:$0xff]   ;;  %991 = vmatpush3.bf16.msra.mxu1 %v1005_v20  ;;  %v66_v27 = vld [vmem:[%s1349_s0 + $0x70] sm:$0xff]  ;;  %v1036_v59 = vmov 0  }
  0x13   :  { %984 = vmatprep.subr.bf16.mxu1 %v1006_v23  ;;  %v67_v28 = vld [vmem:[%s1349_s0 + $0x78] sm:$0xff]  ;;  %939 = vmatpush3.bf16.msra.mxu0 %v1006_v23  ;;  %v68_v29 = vld [vmem:[%s1349_s0 + $0x80] sm:$0xff]  ;;  %v69_v30 = vld [vmem:[%s1349_s0 + $0x88] sm:$0xff] }
  0x14   :  { %940 = vmatprep.subr.bf16.mxu0 %v1007_v26  ;;  %v1008_v31 = vld [vmem:[%s1352_s3 + $0x20] sm:$0xff]   ;;  %v91_v32 = vpack.c.bf16 %v67_v28, %v66_v27  ;;  %v92_v33 = vpack.c.bf16 %v69_v30, %v68_v29  ;;  %v1009_v34 = vld [vmem:[%s1352_s3 + $0x28] sm:$0xff]   ;;  %v70_v35 = vld [vmem:[%s1349_s0 + $0x90] sm:$0xff]  ;;  %1001 = vset.pattern.permute.xlu1 %v1036_v59 }
  0x15   :  { %v71_v36 = vld [vmem:[%s1349_s0 + $0x98] sm:$0xff]  ;;  %v72_v37 = vld [vmem:[%s1349_s0 + $0xa0] sm:$0xff]  ;;  %v73_v38 = vld [vmem:[%s1349_s0 + $0xa8] sm:$0xff] }
  0x16   :  { %992 = vmatpush3.bf16.msra.mxu1 %v1006_v23  ;;  %v1010_v39 = vld [vmem:[%s1352_s3 + $0x30] sm:$0xff]   ;;  %v93_v40 = vpack.c.bf16 %v71_v36, %v70_v35  ;;  %v94_v41 = vpack.c.bf16 %v73_v38, %v72_v37  ;;  %v75_v43 = vld [vmem:[%s1349_s0 + $0xb8] sm:$0xff]  ;;  %v76_v44 = vld [vmem:[%s1349_s0 + $0xc0] sm:$0xff] }
  0x17   :  { %985 = vmatprep.subr.bf16.mxu1 %v1007_v26  ;;  %941 = vmatpush3.bf16.msra.mxu0 %v1007_v26  ;;  %v74_v42 = vld [vmem:[%s1349_s0 + $0xb0] sm:$0xff]  ;;  %v77_v45 = vld [vmem:[%s1349_s0 + $0xc8] sm:$0xff]  ;;  %v79_v49 = vld [vmem:[%s1349_s0 + $0xd8] sm:$0xff] }
  0x18   :  { %911 = vmatmul.mubr.msk.bf16.gmra.mrb[8].mxu0 %vm112_vm0, %v89_v24  ;;  %942 = vmatprep.subr.bf16.mxu0 %v1008_v31  ;;  %v95_v46 = vpack.c.bf16 %v75_v43, %v74_v42  ;;  %v96_v47 = vpack.c.bf16 %v77_v45, %v76_v44  ;;  %v78_v48 = vld [vmem:[%s1349_s0 + $0xd0] sm:$0xff]  ;;  %v80_v50 = vld [vmem:[%s1349_s0 + $0xe0] sm:$0xff]  ;;  %v81_v51 = vld [vmem:[%s1349_s0 + $0xe8] sm:$0xff] }
  0x19   :  { %914 = vmatprep.mubr.msk.bf16.mxu0 %vm112_vm0, %v90_v25  ;;  %v97_v52 = vpack.c.bf16 %v79_v49, %v78_v48  ;;  %v98_v53 = vpack.c.bf16 %v81_v51, %v80_v50  ;;  %v82_v54 = vld [vmem:[%s1349_s0 + $0xf0] sm:$0xff]  ;;  %v83_v55 = vld [vmem:[%s1349_s0 + $0xf8] sm:$0xff]  ;;  %v51_v58 = vld [vmem:[#allocation2] sm:$0x1] }
  0x1a   :  { %993 = vmatpush3.bf16.msra.mxu1 %v1007_v26  ;;  %v99_v56 = vpack.c.bf16 %v83_v55, %v82_v54  ;;  %v1011_v57 = vld [vmem:[%s1352_s3 + $0x38] sm:$0xff]   ;;  %785 = vperm.xlu1 %1001, %v51_v58   ;;  %v1225_v60 = vld [vmem:[%s1351_s2] ss:$0 sm:$0xff] }
  0x1b   :  { %986 = vmatprep.subr.bf16.mxu1 %v1008_v31  ;;  %943 = vmatpush3.bf16.msra.mxu0 %v1008_v31 }
  0x1c   :  { %944 = vmatprep.subr.bf16.mxu0 %v1009_v34 }
  0x1e   :  { %994 = vmatpush3.bf16.msra.mxu1 %v1008_v31 }
  0x1f   :  { %987 = vmatprep.subr.bf16.mxu1 %v1009_v34  ;;  %945 = vmatpush3.bf16.msra.mxu0 %v1009_v34 }
  0x20   :  { %915 = vmatmul.mubr.msk.bf16.gmra.mrb[12].mxu0 %vm112_vm0, %v91_v32  ;;  %946 = vmatprep.subr.bf16.mxu0 %v1010_v39 }
  0x21   :  { %918 = vmatprep.mubr.msk.bf16.mxu0 %vm112_vm0, %v92_v33 }
  0x22   :  { %995 = vmatpush3.bf16.msra.mxu1 %v1009_v34 }
  0x23   :  { %988 = vmatprep.subr.bf16.mxu1 %v1010_v39  ;;  %947 = vmatpush3.bf16.msra.mxu0 %v1010_v39 }
  0x24   :  { %948 = vmatprep.subr.bf16.mxu0 %v1011_v57 }
  0x26   :  { %996 = vmatpush3.bf16.msra.mxu1 %v1010_v39 }
  0x27   :  { %989 = vmatprep.subr.bf16.mxu1 %v1011_v57  ;;  %949 = vmatpush3.bf16.msra.mxu0 %v1011_v57 }
  0x28   :  { %919 = vmatmul.mubr.msk.bf16.gmra.mrb[16].mxu0 %vm112_vm0, %v93_v40 }
  0x29   :  { %922 = vmatprep.mubr.msk.bf16.mxu0 %vm112_vm0, %v94_v41 }
  0x2a   :  { %997 = vmatpush3.bf16.msra.mxu1 %v1011_v57 }
  0x30   :  { %923 = vmatmul.mubr.msk.bf16.gmra.mrb[20].mxu0 %vm112_vm0, %v95_v46 }
  0x31   :  { %926 = vmatprep.mubr.msk.bf16.mxu0 %vm112_vm0, %v96_v47 }
  0x38   :  { %927 = vmatmul.mubr.msk.bf16.gmra.mrb[24].mxu0 %vm112_vm0, %v97_v52 }
  0x39   :  { %930 = vmatprep.mubr.msk.bf16.mxu0 %vm112_vm0, %v98_v53 }
  0x40   :  { %931 = vmatmul.mubr.msk.bf16.gmra.mrb[28].mxu0 %vm112_vm0, %v99_v56 }
  0xdb   :  { %v904_v61 = vpop.f32.mrb[0].mxu0 }
  0xdc   :  { %v204_v62 = vadd.f32 %v904_v61, %v1225_v60  ;;  %v195_v63 = vpop.f32.mrb[1].mxu0 }
  0xdd   :  { %v196_v0 = vadd.f32 %v1225_v60, %v195_v63  ;;  %v905_v1 = vpop.f32.mrb[2].mxu0 }
  0xde   :  { %v207_v2 = vadd.f32 %v905_v1, %v1225_v60  ;;  %v198_v3 = vpop.f32.mrb[3].mxu0  ;;  %v324_v5 = vmax.f32 %v204_v62, 0.0 }
  0xdf   :  { %v199_v4 = vadd.f32 %v1225_v60, %v198_v3  ;;  %v322_v7 = vmax.f32 %v196_v0, 0.0 }
  0xe0   :  { %v325_v6 = vmax.f32 %v207_v2, 0.0 }
  0xe1   :  { %v323_v8 = vmax.f32 %v199_v4, 0.0 }
  0xe2   :  { %v355_v9 = vpack.c.bf16 %v325_v6, %v324_v5 }
  0xe3   :  { %v354_v10 = vpack.c.bf16 %v323_v8, %v322_v7  ;;  %v908_v11 = vpop.f32.mrb[4].mxu0 }
  0xe4   :  { %v220_v12 = vadd.f32 %v908_v11, %v1225_v60  ;;  %v211_v13 = vpop.f32.mrb[5].mxu0 }
  0xe5   :  { %v212_v14 = vadd.f32 %v1225_v60, %v211_v13  ;;  %v909_v15 = vpop.f32.mrb[6].mxu0  ;;  %950 = vmatprep.mubr.bf16.mxu0 %v354_v10 }
  0xe6   :  { %v328_v16 = vmax.f32 %v220_v12, 0.0  ;;  %v223_v17 = vadd.f32 %v909_v15, %v1225_v60  ;;  %v214_v18 = vpop.f32.mrb[7].mxu0  ;;  %951 = vmatmul.mubr.bf16.vlgmr.msra.gmra.mrb[32].mxu0 %v355_v9 }
  0xe7   :  { %v215_v19 = vadd.f32 %v1225_v60, %v214_v18  ;;  %v326_v21 = vmax.f32 %v212_v14, 0.0 }
  0xe8   :  { %v329_v20 = vmax.f32 %v223_v17, 0.0 }
  0xe9   :  { %v327_v22 = vmax.f32 %v215_v19, 0.0 }
  0xea   :  { %v357_v23 = vpack.c.bf16 %v329_v20, %v328_v16 }
  0xeb   :  { %v912_v24 = vpop.f32.mrb[8].mxu0  ;;  %v356_v25 = vpack.c.bf16 %v327_v22, %v326_v21 }
  0xec   :  { %v236_v26 = vadd.f32 %v912_v24, %v1225_v60  ;;  %v227_v27 = vpop.f32.mrb[9].mxu0 }
  0xed   :  { %v228_v28 = vadd.f32 %v1225_v60, %v227_v27  ;;  %v913_v29 = vpop.f32.mrb[10].mxu0  ;;  %954 = vmatprep.mubr.bf16.mxu1 %v356_v25 }
  0xee   :  { %v332_v30 = vmax.f32 %v236_v26, 0.0  ;;  %v239_v31 = vadd.f32 %v913_v29, %v1225_v60  ;;  %v230_v32 = vpop.f32.mrb[11].mxu0  ;;  %955 = vmatmul.mubr.bf16.vlgmr.msra.gmra.mrb[0].mxu1 %v357_v23 }
  0xef   :  { %v231_v33 = vadd.f32 %v1225_v60, %v230_v32  ;;  %v330_v35 = vmax.f32 %v228_v28, 0.0 }
  0xf0   :  { %v333_v34 = vmax.f32 %v239_v31, 0.0 }
  0xf1   :  { %v331_v36 = vmax.f32 %v231_v33, 0.0 }
  0xf2   :  { %v359_v37 = vpack.c.bf16 %v333_v34, %v332_v30 }
  0xf3   :  { %v358_v38 = vpack.c.bf16 %v331_v36, %v330_v35  ;;  %v916_v39 = vpop.f32.mrb[12].mxu0 }
  0xf4   :  { %v252_v40 = vadd.f32 %v916_v39, %v1225_v60  ;;  %v243_v41 = vpop.f32.mrb[13].mxu0 }
  0xf5   :  { %v244_v42 = vadd.f32 %v1225_v60, %v243_v41  ;;  %v917_v43 = vpop.f32.mrb[14].mxu0  ;;  %958 = vmatprep.mubr.bf16.mxu1 %v358_v38 }
  0xf6   :  { %v336_v44 = vmax.f32 %v252_v40, 0.0  ;;  %v255_v45 = vadd.f32 %v917_v43, %v1225_v60  ;;  %v246_v46 = vpop.f32.mrb[15].mxu0  ;;  %959 = vmatmul.mubr.bf16.gmra.mrb[4].mxu1 %v359_v37 }
  0xf7   :  { %v247_v47 = vadd.f32 %v1225_v60, %v246_v46  ;;  %v334_v49 = vmax.f32 %v244_v42, 0.0 }
  0xf8   :  { %v337_v48 = vmax.f32 %v255_v45, 0.0 }
  0xf9   :  { %v335_v50 = vmax.f32 %v247_v47, 0.0  ;;  %v1262_v47 = vld [vmem:[%s1353_s4] ss:$0 sm:$0xff]  ;;  %s1038_s4 = smov [#allocation3]  }
  0xfa   :  { %v361_v51 = vpack.c.bf16 %v337_v48, %v336_v44 }
  0xfb   :  { %v360_v52 = vpack.c.bf16 %v335_v50, %v334_v49  ;;  %v920_v53 = vpop.f32.mrb[16].mxu0 }
  0xfc   :  { %v268_v54 = vadd.f32 %v920_v53, %v1225_v60  ;;  %v259_v55 = vpop.f32.mrb[17].mxu0 }
  0xfd   :  { %v260_v56 = vadd.f32 %v1225_v60, %v259_v55  ;;  %v921_v57 = vpop.f32.mrb[18].mxu0  ;;  %962 = vmatprep.mubr.bf16.mxu1 %v360_v52 }
  0xfe   :  { %v340_v58 = vmax.f32 %v268_v54, 0.0  ;;  %v271_v61 = vadd.f32 %v921_v57, %v1225_v60  ;;  %v262_v62 = vpop.f32.mrb[19].mxu0  ;;  %963 = vmatmul.mubr.bf16.gmra.mrb[8].mxu1 %v361_v51 }
  0xff   :  { %v338_v63 = vmax.f32 %v260_v56, 0.0  ;;  %v263_v0 = vadd.f32 %v1225_v60, %v262_v62 }
 0x100   :  { %v341_v1 = vmax.f32 %v271_v61, 0.0 }
 0x101   :  { %v339_v2 = vmax.f32 %v263_v0, 0.0 }
 0x102   :  { %v363_v3 = vpack.c.bf16 %v341_v1, %v340_v58 }
 0x103   :  { %v362_v4 = vpack.c.bf16 %v339_v2, %v338_v63  ;;  %v924_v5 = vpop.f32.mrb[20].mxu0 }
 0x104   :  { %v284_v6 = vadd.f32 %v924_v5, %v1225_v60  ;;  %v275_v7 = vpop.f32.mrb[21].mxu0 }
 0x105   :  { %966 = vmatprep.mubr.bf16.mxu1 %v362_v4  ;;  %v276_v8 = vadd.f32 %v1225_v60, %v275_v7  ;;  %v925_v9 = vpop.f32.mrb[22].mxu0 }
 0x106   :  { %967 = vmatmul.mubr.bf16.gmra.mrb[12].mxu1 %v363_v3  ;;  %v344_v10 = vmax.f32 %v284_v6, 0.0  ;;  %v287_v11 = vadd.f32 %v925_v9, %v1225_v60  ;;  %v278_v12 = vpop.f32.mrb[23].mxu0 }
 0x107   :  { %v342_v13 = vmax.f32 %v276_v8, 0.0  ;;  %v279_v14 = vadd.f32 %v1225_v60, %v278_v12 }
 0x108   :  { %v345_v15 = vmax.f32 %v287_v11, 0.0 }
 0x109   :  { %v343_v16 = vmax.f32 %v279_v14, 0.0 }
 0x10a   :  { %v365_v17 = vpack.c.bf16 %v345_v15, %v344_v10 }
 0x10b   :  { %v364_v18 = vpack.c.bf16 %v343_v16, %v342_v13  ;;  %v928_v19 = vpop.f32.mrb[24].mxu0 }
 0x10c   :  { %v300_v20 = vadd.f32 %v928_v19, %v1225_v60  ;;  %v291_v21 = vpop.f32.mrb[25].mxu0 }
 0x10d   :  { %970 = vmatprep.mubr.bf16.mxu1 %v364_v18  ;;  %v292_v22 = vadd.f32 %v1225_v60, %v291_v21  ;;  %v929_v23 = vpop.f32.mrb[26].mxu0 }
 0x10e   :  { %971 = vmatmul.mubr.bf16.gmra.mrb[16].mxu1 %v365_v17  ;;  %v348_v24 = vmax.f32 %v300_v20, 0.0  ;;  %v303_v25 = vadd.f32 %v929_v23, %v1225_v60  ;;  %v294_v26 = vpop.f32.mrb[27].mxu0 }
 0x10f   :  { %v346_v27 = vmax.f32 %v292_v22, 0.0  ;;  %v295_v28 = vadd.f32 %v1225_v60, %v294_v26 }
 0x110   :  { %v349_v29 = vmax.f32 %v303_v25, 0.0 }
 0x111   :  { %v347_v30 = vmax.f32 %v295_v28, 0.0 }
 0x112   :  { %v367_v31 = vpack.c.bf16 %v349_v29, %v348_v24 }
 0x113   :  { %v366_v32 = vpack.c.bf16 %v347_v30, %v346_v27  ;;  %v932_v33 = vpop.f32.mrb[28].mxu0 }
 0x114   :  { %v316_v34 = vadd.f32 %v932_v33, %v1225_v60  ;;  %v307_v35 = vpop.f32.mrb[29].mxu0 }
 0x115   :  { %974 = vmatprep.mubr.bf16.mxu1 %v366_v32  ;;  %v308_v36 = vadd.f32 %v1225_v60, %v307_v35  ;;  %v933_v37 = vpop.f32.mrb[30].mxu0 }
 0x116   :  { %v352_v38 = vmax.f32 %v316_v34, 0.0  ;;  %975 = vmatmul.mubr.bf16.gmra.mrb[20].mxu1 %v367_v31  ;;  %v319_v39 = vadd.f32 %v933_v37, %v1225_v60  ;;  %v310_v40 = vpop.f32.mrb[31].mxu0 }
 0x117   :  { %v350_v41 = vmax.f32 %v308_v36, 0.0  ;;  %v311_v42 = vadd.f32 %v1225_v60, %v310_v40  ;;  %v1269_v60 = vld [vmem:[%s1354_s5] ss:$0 sm:$0xff]  ;;  %s823_s5 = sshll.u32 %s1038_s4, 4  ;;  %s824_s5 = int_to_ptr.vmem [resolvable:$true] %s823_s5 }
 0x118   :  { %v353_v43 = vmax.f32 %v319_v39, 0.0  ;;  %s1012_s1 = scalar_lea.vmem %s824_s5, 32  ;;  %p1017_p1 = scmp.lt.s32.totalorder %s824_s5, %s824_s5 }
 0x119   :  { %v351_v44 = vmax.f32 %v311_v42, 0.0  ;;  %p1013_p0 = scmp.ne.s32.totalorder %s824_s5, %s1012_s1  ;;  %p1018_p2 = scmp.lt.s32.totalorder %s1012_s1, %s1012_s1 }
 0x11a   :  { %v369_v45 = vpack.c.bf16 %v353_v43, %v352_v38 }
 0x11b   :  { %v368_v46 = vpack.c.bf16 %v351_v44, %v350_v41  ;;  %p1019_p3 = por %p1018_p2, %p1017_p1 }
 0x11d   :  { %978 = vmatprep.mubr.bf16.mxu1 %v368_v46  ;;  %p1020_p4 = pnand %p1019_p3, %p1013_p0 }
 0x11e   :  { %979 = vmatmul.mubr.bf16.gmra.mrb[24].mxu1 %v369_v45 }
 0x1b9   :  { %v952_v48 = vpop.f32.mrb[32].mxu0 }
 0x1ba   :  { %v467_v49 = vadd.f32 %v952_v48, %v1262_v47  ;;  %v458_v50 = vpop.f32.mrb[33].mxu0 }
 0x1bb   :  { %v459_v51 = vadd.f32 %v1262_v47, %v458_v50  ;;  %v953_v52 = vpop.f32.mrb[34].mxu0 }
 0x1bc   :  { %v587_v53 = vmax.f32 %v467_v49, 0.0  ;;  %v470_v54 = vadd.f32 %v953_v52, %v1262_v47  ;;  %v461_v55 = vpop.f32.mrb[35].mxu0 }
 0x1bd   :  { %v585_v56 = vmax.f32 %v459_v51, 0.0  ;;  %v462_v57 = vadd.f32 %v1262_v47, %v461_v55 }
 0x1be   :  { %v588_v58 = vmax.f32 %v470_v54, 0.0  ;;  %v625_v61 = vmul.f32 %v1269_v60, %v587_v53 }
 0x1bf   :  { %v586_v62 = vmax.f32 %v462_v57, 0.0  ;;  %v623_v63 = vmul.f32 %v1269_v60, %v585_v56 }
 0x1c0   :  { %659 = vadd.xlane.f32.xlu1 %v625_v61  ;;  %v626_v3 = vmul.f32 %v1269_v60, %v588_v58 }
 0x1c1   :  { %v956_v0 = vpop.f32.mrb[0].mxu1  ;;  %655 = vadd.xlane.f32.xlu0 %v623_v63  ;;  %v624_v6 = vmul.f32 %v1269_v60, %v586_v62 }
 0x1c2   :  { %v483_v1 = vadd.f32 %v956_v0, %v1262_v47  ;;  %v474_v2 = vpop.f32.mrb[1].mxu1 }
 0x1c3   :  { %v475_v4 = vadd.f32 %v1262_v47, %v474_v2  ;;  %v957_v5 = vpop.f32.mrb[2].mxu1 }
 0x1c4   :  { %v591_v7 = vmax.f32 %v483_v1, 0.0  ;;  %v486_v8 = vadd.f32 %v957_v5, %v1262_v47  ;;  %v477_v9 = vpop.f32.mrb[3].mxu1  ;;  %661 = vadd.xlane.f32.xlu1 %v626_v3 }
 0x1c5   :  { %v478_v10 = vadd.f32 %v1262_v47, %v477_v9  ;;  %657 = vadd.xlane.f32.xlu0 %v624_v6  ;;  %v589_v13 = vmax.f32 %v475_v4, 0.0 }
 0x1c6   :  { %v592_v11 = vmax.f32 %v486_v8, 0.0  ;;  %v629_v12 = vmul.f32 %v1269_v60, %v591_v7 }
 0x1c7   :  { %v590_v14 = vmax.f32 %v478_v10, 0.0  ;;  %v627_v21 = vmul.f32 %v1269_v60, %v589_v13 }
 0x1c8   :  { %v630_v15 = vmul.f32 %v1269_v60, %v592_v11 }
 0x1c9   :  { %v960_v16 = vpop.f32.mrb[4].mxu1  ;;  %667 = vadd.xlane.f32.xlu0 %v629_v12  ;;  %v628_v25 = vmul.f32 %v1269_v60, %v590_v14 }
 0x1ca   :  { %v499_v17 = vadd.f32 %v960_v16, %v1262_v47  ;;  %v490_v18 = vpop.f32.mrb[5].mxu1  ;;  %669 = vadd.xlane.f32.xlu1 %v630_v15 }
 0x1cb   :  { %v491_v19 = vadd.f32 %v1262_v47, %v490_v18  ;;  %v961_v20 = vpop.f32.mrb[6].mxu1 }
 0x1cc   :  { %v595_v22 = vmax.f32 %v499_v17, 0.0  ;;  %v502_v23 = vadd.f32 %v961_v20, %v1262_v47  ;;  %v493_v24 = vpop.f32.mrb[7].mxu1 }
 0x1cd   :  { %v494_v26 = vadd.f32 %v1262_v47, %v493_v24  ;;  %663 = vadd.xlane.f32.xlu0 %v627_v21  ;;  %v593_v29 = vmax.f32 %v491_v19, 0.0 }
 0x1ce   :  { %v596_v27 = vmax.f32 %v502_v23, 0.0  ;;  %665 = vadd.xlane.f32.xlu1 %v628_v25  ;;  %v633_v28 = vmul.f32 %v1269_v60, %v595_v22 }
 0x1cf   :  { %v594_v30 = vmax.f32 %v494_v26, 0.0  ;;  %v631_v37 = vmul.f32 %v1269_v60, %v593_v29 }
 0x1d0   :  { %v634_v31 = vmul.f32 %v1269_v60, %v596_v27 }
 0x1d1   :  { %v964_v32 = vpop.f32.mrb[8].mxu1  ;;  %675 = vadd.xlane.f32.xlu0 %v633_v28  ;;  %v632_v40 = vmul.f32 %v1269_v60, %v594_v30 }
 0x1d2   :  { %v515_v33 = vadd.f32 %v964_v32, %v1262_v47  ;;  %v506_v34 = vpop.f32.mrb[9].mxu1  ;;  %677 = vadd.xlane.f32.xlu1 %v634_v31 }
 0x1d3   :  { %v507_v35 = vadd.f32 %v1262_v47, %v506_v34  ;;  %v965_v36 = vpop.f32.mrb[10].mxu1 }
 0x1d4   :  { %v599_v38 = vmax.f32 %v515_v33, 0.0  ;;  %v509_v39 = vpop.f32.mrb[11].mxu1  ;;  %v518_v43 = vadd.f32 %v965_v36, %v1262_v47 }
 0x1d5   :  { %671 = vadd.xlane.f32.xlu0 %v631_v37  ;;  %v597_v42 = vmax.f32 %v507_v35, 0.0  ;;  %v510_v48 = vadd.f32 %v1262_v47, %v509_v39 }
 0x1d6   :  { %673 = vadd.xlane.f32.xlu1 %v632_v40  ;;  %v637_v41 = vmul.f32 %v1269_v60, %v599_v38  ;;  %v600_v46 = vmax.f32 %v518_v43, 0.0 }
 0x1d7   :  { %v635_v50 = vmul.f32 %v1269_v60, %v597_v42  ;;  %v598_v55 = vmax.f32 %v510_v48, 0.0 }
 0x1d8   :  { %v638_v58 = vmul.f32 %v1269_v60, %v600_v46 }
 0x1d9   :  { %v968_v44 = vpop.f32.mrb[12].mxu1  ;;  %683 = vadd.xlane.f32.xlu0 %v637_v41  ;;  %v636_v3 = vmul.f32 %v1269_v60, %v598_v55 }
 0x1da   :  { %v522_v45 = vpop.f32.mrb[13].mxu1  ;;  %v531_v56 = vadd.f32 %v968_v44, %v1262_v47 }
 0x1db   :  { %v969_v49 = vpop.f32.mrb[14].mxu1  ;;  %v523_v2 = vadd.f32 %v1262_v47, %v522_v45 }
 0x1dc   :  { %v534_v51 = vadd.f32 %v969_v49, %v1262_v47  ;;  %v525_v52 = vpop.f32.mrb[15].mxu1  ;;  %v603_v1 = vmax.f32 %v531_v56, 0.0 }
 0x1dd   :  { %679 = vadd.xlane.f32.xlu0 %v635_v50  ;;  %v526_v53 = vadd.f32 %v1262_v47, %v525_v52  ;;  %v601_v10 = vmax.f32 %v523_v2, 0.0 }
 0x1de   :  { %v604_v54 = vmax.f32 %v534_v51, 0.0  ;;  %v641_v11 = vmul.f32 %v1269_v60, %v603_v1 }
 0x1df   :  { %v602_v57 = vmax.f32 %v526_v53, 0.0  ;;  %v639_v19 = vmul.f32 %v1269_v60, %v601_v10 }
 0x1e0   :  { %v642_v61 = vmul.f32 %v1269_v60, %v604_v54 }
 0x1e1   :  { %685 = vadd.xlane.f32.xlu0 %v638_v58  ;;  %v972_v62 = vpop.f32.mrb[16].mxu1  ;;  %v640_v63 = vmul.f32 %v1269_v60, %v602_v57 }
 0x1e2   :  { %693 = vadd.xlane.f32.xlu1 %v642_v61  ;;  %v538_v0 = vpop.f32.mrb[17].mxu1  ;;  %v547_v7 = vadd.f32 %v972_v62, %v1262_v47 }
 0x1e3   :  { %v973_v4 = vpop.f32.mrb[18].mxu1  ;;  %v539_v15 = vadd.f32 %v1262_v47, %v538_v0 }
 0x1e4   :  { %v550_v5 = vadd.f32 %v973_v4, %v1262_v47  ;;  %v541_v6 = vpop.f32.mrb[19].mxu1  ;;  %v607_v14 = vmax.f32 %v547_v7, 0.0 }
 0x1e5   :  { %681 = vadd.xlane.f32.xlu0 %v636_v3  ;;  %v542_v8 = vadd.f32 %v1262_v47, %v541_v6  ;;  %v605_v23 = vmax.f32 %v539_v15, 0.0 }
 0x1e6   :  { %689 = vadd.xlane.f32.xlu1 %v640_v63  ;;  %v608_v9 = vmax.f32 %v550_v5, 0.0  ;;  %v645_v24 = vmul.f32 %v1269_v60, %v607_v14 }
 0x1e7   :  { %v606_v12 = vmax.f32 %v542_v8, 0.0  ;;  %v643_v32 = vmul.f32 %v1269_v60, %v605_v23  ;;  %v788_v23 = vlaneseq }
 0x1e8   :  { %v646_v13 = vmul.f32 %v1269_v60, %v608_v9 }
 0x1e9   :  { %691 = vadd.xlane.f32.xlu0 %v641_v11  ;;  %v976_v16 = vpop.f32.mrb[20].mxu1  ;;  %v644_v18 = vmul.f32 %v1269_v60, %v606_v12  ;;  %vm814_vm1 = vcmp.lt.s32.totalorder %v788_v23, 256 }
 0x1ea   :  { %701 = vadd.xlane.f32.xlu1 %v646_v13  ;;  %v554_v17 = vpop.f32.mrb[21].mxu1  ;;  %v563_v25 = vadd.f32 %v976_v16, %v1262_v47 }
 0x1eb   :  { %v977_v20 = vpop.f32.mrb[22].mxu1  ;;  %v555_v31 = vadd.f32 %v1262_v47, %v554_v17 }
 0x1ec   :  { %v566_v21 = vadd.f32 %v977_v20, %v1262_v47  ;;  %v557_v22 = vpop.f32.mrb[23].mxu1  ;;  %v611_v30 = vmax.f32 %v563_v25, 0.0  ;;  %v1037_v25 = vmov 1966171168  }
 0x1ed   :  { %687 = vadd.xlane.f32.xlu0 %v639_v19  ;;  %v558_v26 = vadd.f32 %v1262_v47, %v557_v22  ;;  %v609_v42 = vmax.f32 %v555_v31, 0.0 }
 0x1ee   :  { %697 = vadd.xlane.f32.xlu1 %v644_v18  ;;  %v612_v27 = vmax.f32 %v566_v21, 0.0  ;;  %v649_v43 = vmul.f32 %v1269_v60, %v611_v30 }
 0x1ef   :  { %v610_v28 = vmax.f32 %v558_v26, 0.0  ;;  %v647_v51 = vmul.f32 %v1269_v60, %v609_v42  ;;  %v798_v26 = vunpack.c.l.s4 %v1037_v25 }
 0x1f0   :  { %v650_v29 = vmul.f32 %v1269_v60, %v612_v27 }
 0x1f1   :  { %699 = vadd.xlane.f32.xlu0 %v645_v24  ;;  %v980_v33 = vpop.f32.mrb[24].mxu1  ;;  %v648_v35 = vmul.f32 %v1269_v60, %v610_v28  ;;  %v789_v24 = vshrl.u32 %v788_v23, 7  ;;  %v799_v28 = vunpack.c.0.s8 %v798_v26 }
 0x1f2   :  { %709 = vadd.xlane.f32.xlu1 %v650_v29  ;;  %v579_v34 = vadd.f32 %v980_v33, %v1262_v47  ;;  %v570_v36 = vpop.f32.mrb[25].mxu1 }
 0x1f3   :  { %v571_v37 = vadd.f32 %v1262_v47, %v570_v36  ;;  %v981_v38 = vpop.f32.mrb[26].mxu1  ;;  %v790_v27 = vsub.s32 0, %v789_v24  ;;  %v802_v33 = vsub.s32 %v799_v28, %v789_v24 }
 0x1f4   :  { %v615_v39 = vmax.f32 %v579_v34, 0.0  ;;  %v582_v40 = vadd.f32 %v981_v38, %v1262_v47  ;;  %v573_v41 = vpop.f32.mrb[27].mxu1 }
 0x1f5   :  { %695 = vadd.xlane.f32.xlu0 %v643_v32  ;;  %v574_v44 = vadd.f32 %v1262_v47, %v573_v41  ;;  %v613_v45 = vmax.f32 %v571_v37, 0.0  ;;  %v1333_v47 = vpop.permute.xlu1 %785 }
 0x1f6   :  { %705 = vadd.xlane.f32.xlu1 %v648_v35  ;;  %v653_v46 = vmul.f32 %v1269_v60, %v615_v39  ;;  %v616_v48 = vmax.f32 %v582_v40, 0.0  ;;  %v791_v30 = vrot.slane %v1333_v47, %v790_v27 }
 0x1f7   :  { %v614_v49 = vmax.f32 %v574_v44, 0.0  ;;  %v651_v53 = vmul.f32 %v1269_v60, %v613_v45 }
 0x1f8   :  { %v654_v50 = vmul.f32 %v1269_v60, %v616_v48 }
 0x1f9   :  { %707 = vadd.xlane.f32.xlu0 %v649_v43  ;;  %v652_v52 = vmul.f32 %v1269_v60, %v614_v49 }
 0x1fa   :  { %715 = vadd.xlane.f32.xlu1 %v653_v46 }
 0x1fd   :  { %703 = vadd.xlane.f32.xlu0 %v647_v51 }
 0x1fe   :  { %711 = vadd.xlane.f32.xlu1 %v651_v53 }
 0x202   :  { %717 = vadd.xlane.f32.xlu1 %v654_v50 }
 0x206   :  { %713 = vadd.xlane.f32.xlu1 %v652_v52 }
 0x24d   :  { %v660_v55 = vpop.xlane.xlu1 %659 }
 0x24e   :  { %v656_v54 = vpop.xlane.xlu0 %655 }
 0x24f   :  { %719 = vxpose.xlu0.b32.start [1/16] (narrow) %v656_v54, 8 }
 0x251   :  { %v662_v58 = vpop.xlane.xlu1 %661 }
 0x252   :  { %v658_v56 = vpop.xlane.xlu0 %657 }
 0x253   :  { %720 = vxpose.xlu0.b32.cont [2/16] (narrow) %v658_v56, 8 }
 0x256   :  { %v668_v57 = vpop.xlane.xlu0 %667 }
 0x257   :  { %721 = vxpose.xlu0.b32.cont [3/16] (narrow) %v660_v55, 8  ;;  %v670_v62 = vpop.xlane.xlu1 %669 }
 0x25a   :  { %v664_v61 = vpop.xlane.xlu0 %663 }
 0x25b   :  { %722 = vxpose.xlu0.b32.cont [4/16] (narrow) %v662_v58, 8  ;;  %v666_v60 = vpop.xlane.xlu1 %665 }
 0x25e   :  { %v676_v63 = vpop.xlane.xlu0 %675 }
 0x25f   :  { %723 = vxpose.xlu0.b32.cont [5/16] (narrow) %v664_v61, 8  ;;  %v678_v3 = vpop.xlane.xlu1 %677 }
 0x262   :  { %v672_v0 = vpop.xlane.xlu0 %671 }
 0x263   :  { %724 = vxpose.xlu0.b32.cont [6/16] (narrow) %v666_v60, 8  ;;  %v674_v5 = vpop.xlane.xlu1 %673 }
 0x266   :  { %v684_v1 = vpop.xlane.xlu0 %683 }
 0x267   :  { %725 = vxpose.xlu0.b32.cont [7/16] (narrow) %v668_v57, 8 }
 0x26a   :  { %v680_v2 = vpop.xlane.xlu0 %679 }
 0x26b   :  { %726 = vxpose.xlu0.b32.cont [8/16] (narrow) %v670_v62, 8 }
 0x26e   :  { %v686_v4 = vpop.xlane.xlu0 %685 }
 0x26f   :  { %727 = vxpose.xlu0.b32.cont [9/16] (narrow) %v672_v0, 8  ;;  %v694_v8 = vpop.xlane.xlu1 %693 }
 0x272   :  { %v682_v6 = vpop.xlane.xlu0 %681 }
 0x273   :  { %728 = vxpose.xlu0.b32.cont [10/16] (narrow) %v674_v5, 8  ;;  %v690_v10 = vpop.xlane.xlu1 %689 }
 0x276   :  { %v692_v7 = vpop.xlane.xlu0 %691 }
 0x277   :  { %729 = vxpose.xlu0.b32.cont [11/16] (narrow) %v676_v63, 8  ;;  %v702_v12 = vpop.xlane.xlu1 %701 }
 0x27a   :  { %v688_v9 = vpop.xlane.xlu0 %687 }
 0x27b   :  { %730 = vxpose.xlu0.b32.cont [12/16] (narrow) %v678_v3, 8  ;;  %751 = vxpose.xlu1.b32.start [1/16] (narrow) %v688_v9, 8  ;;  %v698_v14 = vpop.xlane.xlu1 %697 }
 0x27e   :  { %v700_v11 = vpop.xlane.xlu0 %699 }
 0x27f   :  { %731 = vxpose.xlu0.b32.cont [13/16] (narrow) %v680_v2, 8  ;;  %752 = vxpose.xlu1.b32.cont [2/16] (narrow) %v690_v10, 8  ;;  %v710_v15 = vpop.xlane.xlu1 %709 }
 0x282   :  { %v696_v13 = vpop.xlane.xlu0 %695 }
 0x283   :  { %732 = vxpose.xlu0.b32.cont [14/16] (narrow) %v682_v6, 8  ;;  %753 = vxpose.xlu1.b32.cont [3/16] (narrow) %v692_v7, 8  ;;  %v706_v17 = vpop.xlane.xlu1 %705 }
 0x286   :  { %v708_v16 = vpop.xlane.xlu0 %707 }
 0x287   :  { %733 = vxpose.xlu0.b32.cont [15/16] (narrow) %v684_v1, 8  ;;  %754 = vxpose.xlu1.b32.cont [4/16] (narrow) %v694_v8, 8  ;;  %v716_v19 = vpop.xlane.xlu1 %715 }
 0x28a   :  { %v704_v18 = vpop.xlane.xlu0 %703 }
 0x28b   :  { %734 = vxpose.xlu0.b32.end [16/16] (narrow) %v686_v4, 8  ;;  %755 = vxpose.xlu1.b32.cont [5/16] (narrow) %v696_v13, 8  ;;  %v712_v20 = vpop.xlane.xlu1 %711 }
 0x28f   :  { %756 = vxpose.xlu1.b32.cont [6/16] (narrow) %v698_v14, 8  ;;  %v718_v21 = vpop.xlane.xlu1 %717 }
 0x293   :  { %757 = vxpose.xlu1.b32.cont [7/16] (narrow) %v700_v11, 8  ;;  %v714_v22 = vpop.xlane.xlu1 %713 }
 0x297   :  { %758 = vxpose.xlu1.b32.cont [8/16] (narrow) %v702_v12, 8 }
 0x29b   :  { %759 = vxpose.xlu1.b32.cont [9/16] (narrow) %v704_v18, 8 }
 0x29f   :  { %760 = vxpose.xlu1.b32.cont [10/16] (narrow) %v706_v17, 8 }
 0x2a3   :  { %761 = vxpose.xlu1.b32.cont [11/16] (narrow) %v708_v16, 8 }
 0x2a7   :  { %762 = vxpose.xlu1.b32.cont [12/16] (narrow) %v710_v15, 8 }
 0x2ab   :  { %763 = vxpose.xlu1.b32.cont [13/16] (narrow) %v712_v20, 8 }
 0x2af   :  { %764 = vxpose.xlu1.b32.cont [14/16] (narrow) %v714_v22, 8 }
 0x2b3   :  { %765 = vxpose.xlu1.b32.cont [15/16] (narrow) %v716_v19, 8 }
 0x2b4   :  { %1002 = vset.pattern.permute.xlu0 %v1036_v59 }
 0x2b7   :  { %766 = vxpose.xlu1.b32.end [16/16] (narrow) %v718_v21, 8 }
 0x2cf   :  { %v735_v29 = vpop.trf.xlu0 }
 0x2d0   :  { %v792_v32 = vadd.f32 %v791_v30, %v735_v29 }
 0x2fb   :  { %v767_v31 = vpop.trf.xlu1 }
 0x2fc   :  { %v793_v34 = vadd.f32 %v791_v30, %v767_v31 }
 0x2fe   :  { %v796_v35 = vcombine.low %v792_v32, %v793_v34 }
 0x300   :  { %v803_v36 = vrot.slane %v796_v35, %v802_v33 }
 0x302   :  { %v810_v59 = vrot.slane %v803_v36, %v802_v33 }
 0x304   :  { %816 = vst.msk [vmem:[#allocation3] sm:$0x3] %vm814_vm1, %v810_v59 }
 0x305   :  { %1023 = shalt.err (!%p1020_p4)
}
 0x306   :  { %s1024_s14 = scalar_lea.hbm %s1356_s7, 32 }
 0x307   :  { %p1025_p5 = scmp.ne.s32.totalorder %s1356_s7, %s1024_s14  ;;  %p1028_p6 = scmp.lt.u32.totalorder %s1024_s14, %s1356_s7 }
 0x309   :  { %p1030_p7 = pnand %p1028_p6, %p1025_p5 }
 0x30b   :  { %1033 = shalt.err (!%p1030_p7)
}
 0x30c   :  { %826 = dma.vmem_to_hbm [thread:$0]  %s824_s5, 32, %s1356_s7, [#allocation4]  }
 0x30d   :  { %1034 = dma.done.wait [#allocation4], 32  }
 0x30e   :  { %1035 = vsyncadd [#allocation4], 4294967264 }
 0x30f   :  { %830 = vsyncpa [#allocation4], 1 }

// kernel: tpu_custom_call.1
= control target key start
LH: loop header
LB: loop body
LE: loop exit
PB: predicated region body
PF: predicated region fallthrough
CT: control target
= control target key end

     0   :  { %vm126_vm0 = vcmask 130048   ;;  %vm862_vm1 = vcmask 7168   ;;  %s1597_s1 = inlined_call_operand.vmem [shape: bf16[16,128], index: 1, kind: input, shape index: {}]   ;;  %s1598_s0 = inlined_call_operand.vmem [shape: f32[256,16], index: 0, kind: input, shape index: {}]   ;;  %s1599_s3 = inlined_call_operand.vmem [shape: bf16[128,128], index: 3, kind: input, shape index: {}]   ;;  %s1600_s5 = inlined_call_operand.vmem [shape: bf16[128,1], index: 5, kind: input, shape index: {}]   ;;  %s1601_s2 = inlined_call_operand.vmem [shape: f32[1,128], index: 2, kind: input, shape index: {}]   ;;  %s1602_s6 = inlined_call_operand.<no memory space> [shape: f32[1,1], index: 6, kind: input, shape index: {}]   ;;  %s1603_s4 = inlined_call_operand.vmem [shape: f32[1,128], index: 4, kind: input, shape index: {}]   ;;  %s1604_s7 = inlined_call_operand.vmem [shape: f32[256,1], index: 7, kind: output, shape index: {}]  }
   0x1   :  { %v1132_v0 = vld [vmem:[%s1597_s1] sm:$0xff]   ;;  %v67_v2 = vld [vmem:[%s1598_s0 + $0x8] sm:$0xff]  ;;  %v68_v3 = vld [vmem:[%s1598_s0 + $0x10] sm:$0xff] }
   0x2   :  { %v66_v1 = vld [vmem:[%s1598_s0] sm:$0xff]  ;;  %1000 = vmatprep.subr.bf16.mxu0 %v1132_v0  ;;  %v69_v5 = vld [vmem:[%s1598_s0 + $0x18] sm:$0xff]  ;;  %v71_v7 = vld [vmem:[%s1598_s0 + $0x28] sm:$0xff]  ;;  %1130 = vmatprep.subr.bf16.mxu1 %v1132_v0 }
   0x3   :  { %v98_v4 = vpack.c.bf16 %v67_v2, %v66_v1  ;;  %v70_v6 = vld [vmem:[%s1598_s0 + $0x20] sm:$0xff]  ;;  %1001 = vmatpush3.bf16.msra.mxu0 %v1132_v0  ;;  %v99_v8 = vpack.c.bf16 %v69_v5, %v68_v3  ;;  %1131 = vmatpush3.bf16.msra.mxu1 %v1132_v0  ;;  %v72_v10 = vld [vmem:[%s1598_s0 + $0x30] sm:$0xff]  ;;  %v73_v11 = vld [vmem:[%s1598_s0 + $0x38] sm:$0xff] }
   0x4   :  { %v100_v9 = vpack.c.bf16 %v71_v7, %v70_v6  ;;  %v82_v12 = vld [vmem:[%s1598_s0 + $0x80] sm:$0xff]  ;;  %v83_v13 = vld [vmem:[%s1598_s0 + $0x88] sm:$0xff]  ;;  %v84_v15 = vld [vmem:[%s1598_s0 + $0x90] sm:$0xff]  ;;  %v101_v23 = vpack.c.bf16 %v73_v11, %v72_v10 }
   0x5   :  { %1002 = vmatprep.mubr.msk.bf16.mxu0 %vm126_vm0, %v98_v4  ;;  %v106_v14 = vpack.c.bf16 %v83_v13, %v82_v12  ;;  %v85_v16 = vld [vmem:[%s1598_s0 + $0x98] sm:$0xff]  ;;  %v86_v17 = vld [vmem:[%s1598_s0 + $0xa0] sm:$0xff]  ;;  %v75_v19 = vld [vmem:[%s1598_s0 + $0x48] sm:$0xff] }
   0x6   :  { %1003 = vmatmul.mubr.msk.bf16.vlgmr.msra.gmra.mrb[0].mxu0 %vm126_vm0, %v99_v8  ;;  %v74_v18 = vld [vmem:[%s1598_s0 + $0x40] sm:$0xff]  ;;  %v107_v20 = vpack.c.bf16 %v85_v16, %v84_v15  ;;  %v87_v21 = vld [vmem:[%s1598_s0 + $0xa8] sm:$0xff]  ;;  %v88_v24 = vld [vmem:[%s1598_s0 + $0xb0] sm:$0xff] }
   0x7   :  { %1006 = vmatprep.mubr.msk.bf16.mxu0 %vm126_vm0, %v100_v9  ;;  %1018 = vmatprep.mubr.msk.bf16.mxu1 %vm126_vm0, %v106_v14  ;;  %v108_v22 = vpack.c.bf16 %v87_v21, %v86_v17  ;;  %v89_v25 = vld [vmem:[%s1598_s0 + $0xb8] sm:$0xff]  ;;  %v102_v26 = vpack.c.bf16 %v75_v19, %v74_v18  ;;  %v90_v27 = vld [vmem:[%s1598_s0 + $0xc0] sm:$0xff]  ;;  %v91_v28 = vld [vmem:[%s1598_s0 + $0xc8] sm:$0xff] }
   0x8   :  { %1019 = vmatmul.mubr.msk.bf16.vlgmr.msra.gmra.mrb[0].mxu1 %vm126_vm0, %v107_v20  ;;  %v1133_v29 = vld [vmem:[%s1599_s3] sm:$0xff]   ;;  %v76_v30 = vld [vmem:[%s1598_s0 + $0x50] sm:$0xff]  ;;  %v77_v31 = vld [vmem:[%s1598_s0 + $0x58] sm:$0xff]  ;;  %v109_v34 = vpack.c.bf16 %v89_v25, %v88_v24  ;;  %v110_v36 = vpack.c.bf16 %v91_v28, %v90_v27 }
   0x9   :  { %1022 = vmatprep.mubr.msk.bf16.mxu1 %vm126_vm0, %v108_v22  ;;  %v1134_v32 = vld [vmem:[%s1599_s3 + $0x8] sm:$0xff]   ;;  %v78_v33 = vld [vmem:[%s1598_s0 + $0x60] sm:$0xff]  ;;  %1034 = vmatprep.subr.bf16.mxu1 %v1133_v29  ;;  %v1135_v37 = vld [vmem:[%s1599_s3 + $0x10] sm:$0xff]   ;;  %v103_v38 = vpack.c.bf16 %v77_v31, %v76_v30 }
   0xa   :  { %v79_v35 = vld [vmem:[%s1598_s0 + $0x68] sm:$0xff]  ;;  %1035 = vmatpush3.bf16.msra.mxu1 %v1133_v29  ;;  %v92_v40 = vld [vmem:[%s1598_s0 + $0xd0] sm:$0xff]  ;;  %v93_v41 = vld [vmem:[%s1598_s0 + $0xd8] sm:$0xff] }
   0xb   :  { %1036 = vmatprep.subr.bf16.mxu1 %v1134_v32  ;;  %v104_v39 = vpack.c.bf16 %v79_v35, %v78_v33  ;;  %v94_v42 = vld [vmem:[%s1598_s0 + $0xe0] sm:$0xff]  ;;  %v95_v43 = vld [vmem:[%s1598_s0 + $0xe8] sm:$0xff]  ;;  %v1136_v44 = vld [vmem:[%s1599_s3 + $0x18] sm:$0xff]   ;;  %v111_v45 = vpack.c.bf16 %v93_v41, %v92_v40 }
   0xc   :  { %v80_v46 = vld [vmem:[%s1598_s0 + $0x70] sm:$0xff]  ;;  %v81_v47 = vld [vmem:[%s1598_s0 + $0x78] sm:$0xff]  ;;  %v112_v48 = vpack.c.bf16 %v95_v43, %v94_v42  ;;  %v1137_v49 = vld [vmem:[%s1599_s3 + $0x20] sm:$0xff]  }
   0xd   :  { %v105_v50 = vpack.c.bf16 %v81_v47, %v80_v46  ;;  %v96_v51 = vld [vmem:[%s1598_s0 + $0xf0] sm:$0xff]  ;;  %v97_v52 = vld [vmem:[%s1598_s0 + $0xf8] sm:$0xff]  ;;  %v1138_v53 = vld [vmem:[%s1599_s3 + $0x28] sm:$0xff]  }
   0xe   :  { %1007 = vmatmul.mubr.msk.bf16.gmra.mrb[4].mxu0 %vm126_vm0, %v101_v23  ;;  %1037 = vmatpush3.bf16.msra.mxu1 %v1134_v32  ;;  %v113_v54 = vpack.c.bf16 %v97_v52, %v96_v51  ;;  %v1139_v55 = vld [vmem:[%s1599_s3 + $0x30] sm:$0xff]   ;;  %v1140_v56 = vld [vmem:[%s1599_s3 + $0x38] sm:$0xff]   ;;  %v1141_v57 = vld [vmem:[%s1600_s5] sm:$0xff]  }
   0xf   :  { %1010 = vmatprep.mubr.msk.bf16.mxu0 %vm126_vm0, %v102_v26  ;;  %1038 = vmatprep.subr.bf16.mxu1 %v1135_v37  ;;  %v1142_v58 = vld [vmem:[%s1600_s5 + $0x8] sm:$0xff]   ;;  %v1143_v59 = vld [vmem:[%s1600_s5 + $0x10] sm:$0xff]   ;;  %v1144_v60 = vld [vmem:[%s1600_s5 + $0x18] sm:$0xff]  }
  0x10   :  { %1023 = vmatmul.mubr.msk.bf16.gmra.mrb[4].mxu1 %vm126_vm0, %v109_v34  ;;  %1082 = vmatprep.subr.bf16.mxu0 %v1141_v57  ;;  %v1145_v61 = vld [vmem:[%s1600_s5 + $0x20] sm:$0xff]   ;;  %v1146_v62 = vld [vmem:[%s1600_s5 + $0x28] sm:$0xff]  }
  0x11   :  { %1026 = vmatprep.mubr.msk.bf16.mxu1 %vm126_vm0, %v110_v36  ;;  %1083 = vmatpush3.bf16.msra.mxu0 %v1141_v57  ;;  %v1349_v63 = vld [vmem:[%s1601_s2] ss:$0 sm:$0xff] }
  0x12   :  { %1039 = vmatpush3.bf16.msra.mxu1 %v1135_v37  ;;  %1084 = vmatprep.subr.bf16.mxu0 %v1142_v58 }
  0x13   :  { %1040 = vmatprep.subr.bf16.mxu1 %v1136_v44 }
  0x15   :  { %1085 = vmatpush3.bf16.msra.mxu0 %v1142_v58 }
  0x16   :  { %1011 = vmatmul.mubr.msk.bf16.gmra.mrb[8].mxu0 %vm126_vm0, %v103_v38  ;;  %1041 = vmatpush3.bf16.msra.mxu1 %v1136_v44 }
  0x17   :  { %1014 = vmatprep.mubr.msk.bf16.mxu0 %vm126_vm0, %v104_v39  ;;  %1042 = vmatprep.subr.bf16.mxu1 %v1137_v49 }
  0x18   :  { %1027 = vmatmul.mubr.msk.bf16.gmra.mrb[8].mxu1 %vm126_vm0, %v111_v45  ;;  %1086 = vmatprep.subr.bf16.mxu0 %v1143_v59 }
  0x19   :  { %1030 = vmatprep.mubr.msk.bf16.mxu1 %vm126_vm0, %v112_v48  ;;  %1087 = vmatpush3.bf16.msra.mxu0 %v1143_v59 }
  0x1a   :  { %1043 = vmatpush3.bf16.msra.mxu1 %v1137_v49  ;;  %1088 = vmatprep.subr.bf16.mxu0 %v1144_v60 }
  0x1b   :  { %1044 = vmatprep.subr.bf16.mxu1 %v1138_v53 }
  0x1d   :  { %1089 = vmatpush3.bf16.msra.mxu0 %v1144_v60 }
  0x1e   :  { %1015 = vmatmul.mubr.msk.bf16.gmra.mrb[12].mxu0 %vm126_vm0, %v105_v50  ;;  %1045 = vmatpush3.bf16.msra.mxu1 %v1138_v53 }
  0x1f   :  { %1046 = vmatprep.subr.bf16.mxu1 %v1139_v55  ;;  %1090 = vmatprep.subr.bf16.mxu0 %v1145_v61 }
  0x20   :  { %1031 = vmatmul.mubr.msk.bf16.gmra.mrb[12].mxu1 %vm126_vm0, %v113_v54 }
  0x21   :  { %1091 = vmatpush3.bf16.msra.mxu0 %v1145_v61 }
  0x22   :  { %1047 = vmatpush3.bf16.msra.mxu1 %v1139_v55  ;;  %1092 = vmatprep.subr.bf16.mxu0 %v1146_v62 }
  0x23   :  { %1048 = vmatprep.subr.bf16.mxu1 %v1140_v56 }
  0x25   :  { %1093 = vmatpush3.bf16.msra.mxu0 %v1146_v62 }
  0x26   :  { %1049 = vmatpush3.bf16.msra.mxu1 %v1140_v56 }
  0xd9   :  { %v1004_v0 = vpop.f32.mrb[0].mxu0 }
  0xda   :  { %v218_v1 = vadd.f32 %v1004_v0, %v1349_v63  ;;  %v209_v2 = vpop.f32.mrb[1].mxu0 }
  0xdb   :  { %v210_v3 = vadd.f32 %v1349_v63, %v209_v2  ;;  %v1005_v4 = vpop.f32.mrb[2].mxu0  ;;  %v1020_v8 = vpop.f32.mrb[0].mxu1 }
  0xdc   :  { %v221_v5 = vadd.f32 %v1005_v4, %v1349_v63  ;;  %v212_v6 = vpop.f32.mrb[3].mxu0  ;;  %v338_v9 = vmax.f32 %v218_v1, 0.0  ;;  %v282_v11 = vadd.f32 %v1020_v8, %v1349_v63  ;;  %v273_v12 = vpop.f32.mrb[1].mxu1 }
  0xdd   :  { %v213_v7 = vadd.f32 %v1349_v63, %v212_v6  ;;  %v336_v13 = vmax.f32 %v210_v3, 0.0  ;;  %v274_v15 = vadd.f32 %v1349_v63, %v273_v12  ;;  %v1021_v16 = vpop.f32.mrb[2].mxu1 }
  0xde   :  { %v339_v10 = vmax.f32 %v221_v5, 0.0  ;;  %v354_v18 = vmax.f32 %v282_v11, 0.0  ;;  %v285_v19 = vadd.f32 %v1021_v16, %v1349_v63  ;;  %v276_v20 = vpop.f32.mrb[3].mxu1 }
  0xdf   :  { %v337_v14 = vmax.f32 %v213_v7, 0.0  ;;  %v352_v23 = vmax.f32 %v274_v15, 0.0  ;;  %v277_v24 = vadd.f32 %v1349_v63, %v276_v20 }
  0xe0   :  { %v369_v17 = vpack.c.bf16 %v339_v10, %v338_v9  ;;  %v355_v27 = vmax.f32 %v285_v19, 0.0 }
  0xe1   :  { %v368_v21 = vpack.c.bf16 %v337_v14, %v336_v13  ;;  %v1008_v22 = vpop.f32.mrb[4].mxu0  ;;  %v353_v30 = vmax.f32 %v277_v24, 0.0 }
  0xe2   :  { %v234_v25 = vadd.f32 %v1008_v22, %v1349_v63  ;;  %v225_v26 = vpop.f32.mrb[5].mxu0  ;;  %v1362_v33 = vpack.c.bf16 %v355_v27, %v354_v18 }
  0xe3   :  { %v226_v28 = vadd.f32 %v1349_v63, %v225_v26  ;;  %v1009_v29 = vpop.f32.mrb[6].mxu0  ;;  %1050 = vmatprep.mubr.bf16.mxu1 %v368_v21  ;;  %v1365_v35 = vpack.c.bf16 %v353_v30, %v352_v23  ;;  %v1024_v36 = vpop.f32.mrb[4].mxu1 }
  0xe4   :  { %v237_v31 = vadd.f32 %v1009_v29, %v1349_v63  ;;  %v228_v32 = vpop.f32.mrb[7].mxu0  ;;  %1051 = vmatmul.mubr.bf16.vlgmr.msra.gmra.mrb[16].mxu1 %v369_v17  ;;  %v342_v37 = vmax.f32 %v234_v25, 0.0  ;;  %v298_v39 = vadd.f32 %v1024_v36, %v1349_v63  ;;  %v289_v40 = vpop.f32.mrb[5].mxu1 }
  0xe5   :  { %v229_v34 = vadd.f32 %v1349_v63, %v228_v32  ;;  %v340_v41 = vmax.f32 %v226_v28, 0.0  ;;  %v290_v43 = vadd.f32 %v1349_v63, %v289_v40  ;;  %v1025_v44 = vpop.f32.mrb[6].mxu1 }
  0xe6   :  { %v343_v38 = vmax.f32 %v237_v31, 0.0  ;;  %v358_v46 = vmax.f32 %v298_v39, 0.0  ;;  %v301_v47 = vadd.f32 %v1025_v44, %v1349_v63  ;;  %v292_v48 = vpop.f32.mrb[7].mxu1 }
  0xe7   :  { %v341_v42 = vmax.f32 %v229_v34, 0.0  ;;  %v356_v51 = vmax.f32 %v290_v43, 0.0  ;;  %v293_v52 = vadd.f32 %v1349_v63, %v292_v48 }
  0xe8   :  { %v371_v45 = vpack.c.bf16 %v343_v38, %v342_v37  ;;  %v359_v55 = vmax.f32 %v301_v47, 0.0 }
  0xe9   :  { %v370_v49 = vpack.c.bf16 %v341_v42, %v340_v41  ;;  %v1012_v50 = vpop.f32.mrb[8].mxu0  ;;  %v357_v58 = vmax.f32 %v293_v52, 0.0 }
  0xea   :  { %v250_v53 = vadd.f32 %v1012_v50, %v1349_v63  ;;  %v241_v54 = vpop.f32.mrb[9].mxu0  ;;  %v379_v61 = vpack.c.bf16 %v359_v55, %v358_v46 }
  0xeb   :  { %v242_v56 = vadd.f32 %v1349_v63, %v241_v54  ;;  %v1013_v57 = vpop.f32.mrb[10].mxu0  ;;  %1054 = vmatprep.mubr.bf16.mxu1 %v370_v49  ;;  %v378_v0 = vpack.c.bf16 %v357_v58, %v356_v51  ;;  %v1028_v1 = vpop.f32.mrb[8].mxu1  ;;  %v1148_v51 = vld [vmem:[%s1600_s5 + $0x38] sm:$0xff]  }
  0xec   :  { %v253_v59 = vadd.f32 %v1013_v57, %v1349_v63  ;;  %v244_v60 = vpop.f32.mrb[11].mxu0  ;;  %1055 = vmatmul.mubr.bf16.gmra.mrb[20].mxu1 %v371_v45  ;;  %v346_v2 = vmax.f32 %v250_v53, 0.0  ;;  %v314_v4 = vadd.f32 %v1028_v1, %v1349_v63  ;;  %v305_v5 = vpop.f32.mrb[9].mxu1 }
  0xed   :  { %v245_v62 = vadd.f32 %v1349_v63, %v244_v60  ;;  %v344_v6 = vmax.f32 %v242_v56, 0.0  ;;  %v306_v8 = vadd.f32 %v1349_v63, %v305_v5  ;;  %v1029_v9 = vpop.f32.mrb[10].mxu1 }
  0xee   :  { %v347_v3 = vmax.f32 %v253_v59, 0.0  ;;  %v362_v11 = vmax.f32 %v314_v4, 0.0  ;;  %v317_v12 = vadd.f32 %v1029_v9, %v1349_v63  ;;  %v308_v13 = vpop.f32.mrb[11].mxu1 }
  0xef   :  { %v345_v7 = vmax.f32 %v245_v62, 0.0  ;;  %v360_v16 = vmax.f32 %v306_v8, 0.0  ;;  %v309_v17 = vadd.f32 %v1349_v63, %v308_v13 }
  0xf0   :  { %v373_v10 = vpack.c.bf16 %v347_v3, %v346_v2  ;;  %v363_v20 = vmax.f32 %v317_v12, 0.0 }
  0xf1   :  { %v372_v14 = vpack.c.bf16 %v345_v7, %v344_v6  ;;  %v1016_v15 = vpop.f32.mrb[12].mxu0  ;;  %v361_v23 = vmax.f32 %v309_v17, 0.0 }
  0xf2   :  { %v266_v18 = vadd.f32 %v1016_v15, %v1349_v63  ;;  %v257_v19 = vpop.f32.mrb[13].mxu0  ;;  %v381_v26 = vpack.c.bf16 %v363_v20, %v362_v11 }
  0xf3   :  { %v258_v21 = vadd.f32 %v1349_v63, %v257_v19  ;;  %v1017_v22 = vpop.f32.mrb[14].mxu0  ;;  %1058 = vmatprep.mubr.bf16.mxu1 %v372_v14  ;;  %v380_v28 = vpack.c.bf16 %v361_v23, %v360_v16  ;;  %v1032_v29 = vpop.f32.mrb[12].mxu1 }
  0xf4   :  { %v269_v24 = vadd.f32 %v1017_v22, %v1349_v63  ;;  %v260_v25 = vpop.f32.mrb[15].mxu0  ;;  %1059 = vmatmul.mubr.bf16.gmra.mrb[24].mxu1 %v373_v10  ;;  %v350_v30 = vmax.f32 %v266_v18, 0.0  ;;  %v330_v32 = vadd.f32 %v1032_v29, %v1349_v63  ;;  %v321_v34 = vpop.f32.mrb[13].mxu1 }
  0xf5   :  { %v261_v27 = vadd.f32 %v1349_v63, %v260_v25  ;;  %v348_v36 = vmax.f32 %v258_v21, 0.0  ;;  %v322_v38 = vadd.f32 %v1349_v63, %v321_v34  ;;  %v1033_v39 = vpop.f32.mrb[14].mxu1 }
  0xf6   :  { %v351_v31 = vmax.f32 %v269_v24, 0.0  ;;  %v366_v41 = vmax.f32 %v330_v32, 0.0  ;;  %v333_v42 = vadd.f32 %v1033_v39, %v1349_v63  ;;  %v324_v43 = vpop.f32.mrb[15].mxu1 }
  0xf7   :  { %v349_v37 = vmax.f32 %v261_v27, 0.0  ;;  %v364_v45 = vmax.f32 %v322_v38, 0.0  ;;  %v325_v46 = vadd.f32 %v1349_v63, %v324_v43  ;;  %v1147_v63 = vld [vmem:[%s1600_s5 + $0x30] sm:$0xff]  }
  0xf8   :  { %v375_v40 = vpack.c.bf16 %v351_v31, %v350_v30  ;;  %v367_v47 = vmax.f32 %v333_v42, 0.0  ;;  %1094 = vmatprep.subr.bf16.mxu0 %v1147_v63 }
  0xf9   :  { %v374_v44 = vpack.c.bf16 %v349_v37, %v348_v36  ;;  %v365_v48 = vmax.f32 %v325_v46, 0.0  ;;  %1095 = vmatpush3.bf16.msra.mxu0 %v1147_v63 }
  0xfa   :  { %v383_v49 = vpack.c.bf16 %v367_v47, %v366_v41  ;;  %1096 = vmatprep.subr.bf16.mxu0 %v1148_v51 }
  0xfb   :  { %1062 = vmatprep.mubr.bf16.mxu1 %v374_v44  ;;  %v382_v50 = vpack.c.bf16 %v365_v48, %v364_v45 }
  0xfc   :  { %1063 = vmatmul.mubr.bf16.gmra.mrb[28].mxu1 %v375_v40 }
  0xfd   :  { %1066 = vmatprep.mubr.bf16.mxu1 %v1365_v35  ;;  %1097 = vmatpush3.bf16.msra.mxu0 %v1148_v51  ;;  %v1401_v35 = vld [vmem:[%s1603_s4] ss:$0 sm:$0xff] }
 0x104   :  { %1067 = vmatmul.mubr.bf16.gmra.mrb[32].mxu1 %v1362_v33  ;;  %v12_v33 = vstv %s1602_s6 }
 0x105   :  { %1070 = vmatprep.mubr.bf16.mxu1 %v378_v0  ;;  %13 = vst [vmem:[#allocation2] sm:$0x1] %v12_v33 }
 0x10c   :  { %1071 = vmatmul.mubr.bf16.gmra.mrb[36].mxu1 %v379_v61 }
 0x10d   :  { %1074 = vmatprep.mubr.bf16.mxu1 %v380_v28 }
 0x114   :  { %1075 = vmatmul.mubr.bf16.gmra.mrb[40].mxu1 %v381_v26 }
 0x115   :  { %1078 = vmatprep.mubr.bf16.mxu1 %v382_v50 }
 0x11c   :  { %1079 = vmatmul.mubr.bf16.gmra.mrb[44].mxu1 %v383_v49 }
 0x1b7   :  { %v1052_v52 = vpop.f32.mrb[16].mxu1 }
 0x1b8   :  { %v481_v53 = vadd.f32 %v1052_v52, %v1401_v35  ;;  %v472_v54 = vpop.f32.mrb[17].mxu1 }
 0x1b9   :  { %v473_v55 = vadd.f32 %v1401_v35, %v472_v54  ;;  %v1053_v56 = vpop.f32.mrb[18].mxu1 }
 0x1ba   :  { %v484_v57 = vadd.f32 %v1053_v56, %v1401_v35  ;;  %v475_v58 = vpop.f32.mrb[19].mxu1  ;;  %v601_v60 = vmax.f32 %v481_v53, 0.0 }
 0x1bb   :  { %v476_v59 = vadd.f32 %v1401_v35, %v475_v58  ;;  %v599_v62 = vmax.f32 %v473_v55, 0.0 }
 0x1bc   :  { %v602_v61 = vmax.f32 %v484_v57, 0.0 }
 0x1bd   :  { %v600_v0 = vmax.f32 %v476_v59, 0.0 }
 0x1be   :  { %v632_v1 = vpack.c.bf16 %v602_v61, %v601_v60 }
 0x1bf   :  { %v631_v2 = vpack.c.bf16 %v600_v0, %v599_v62  ;;  %v1056_v3 = vpop.f32.mrb[20].mxu1 }
 0x1c0   :  { %v497_v4 = vadd.f32 %v1056_v3, %v1401_v35  ;;  %v488_v5 = vpop.f32.mrb[21].mxu1 }
 0x1c1   :  { %v489_v6 = vadd.f32 %v1401_v35, %v488_v5  ;;  %v1057_v7 = vpop.f32.mrb[22].mxu1  ;;  %1098 = vmatprep.mubr.bf16.mxu0 %v631_v2 }
 0x1c2   :  { %v500_v8 = vadd.f32 %v1057_v7, %v1401_v35  ;;  %v491_v9 = vpop.f32.mrb[23].mxu1  ;;  %1099 = vmatmul.mubr.bf16.vlgmr.msra.gmra.mrb[16].mxu0 %v632_v1  ;;  %v605_v11 = vmax.f32 %v497_v4, 0.0 }
 0x1c3   :  { %v492_v10 = vadd.f32 %v1401_v35, %v491_v9  ;;  %v603_v13 = vmax.f32 %v489_v6, 0.0 }
 0x1c4   :  { %v606_v12 = vmax.f32 %v500_v8, 0.0 }
 0x1c5   :  { %v604_v14 = vmax.f32 %v492_v10, 0.0 }
 0x1c6   :  { %v634_v15 = vpack.c.bf16 %v606_v12, %v605_v11 }
 0x1c7   :  { %v633_v16 = vpack.c.bf16 %v604_v14, %v603_v13  ;;  %v1060_v17 = vpop.f32.mrb[24].mxu1 }
 0x1c8   :  { %v513_v18 = vadd.f32 %v1060_v17, %v1401_v35  ;;  %v504_v19 = vpop.f32.mrb[25].mxu1 }
 0x1c9   :  { %v505_v20 = vadd.f32 %v1401_v35, %v504_v19  ;;  %v1061_v21 = vpop.f32.mrb[26].mxu1  ;;  %1102 = vmatprep.mubr.bf16.mxu0 %v633_v16 }
 0x1ca   :  { %v516_v22 = vadd.f32 %v1061_v21, %v1401_v35  ;;  %v507_v23 = vpop.f32.mrb[27].mxu1  ;;  %1103 = vmatmul.mubr.bf16.gmra.mrb[20].mxu0 %v634_v15  ;;  %v609_v25 = vmax.f32 %v513_v18, 0.0 }
 0x1cb   :  { %v508_v24 = vadd.f32 %v1401_v35, %v507_v23  ;;  %v607_v27 = vmax.f32 %v505_v20, 0.0 }
 0x1cc   :  { %v610_v26 = vmax.f32 %v516_v22, 0.0 }
 0x1cd   :  { %v608_v28 = vmax.f32 %v508_v24, 0.0 }
 0x1ce   :  { %v636_v29 = vpack.c.bf16 %v610_v26, %v609_v25 }
 0x1cf   :  { %v635_v30 = vpack.c.bf16 %v608_v28, %v607_v27  ;;  %v1064_v31 = vpop.f32.mrb[28].mxu1 }
 0x1d0   :  { %v529_v32 = vadd.f32 %v1064_v31, %v1401_v35  ;;  %v520_v34 = vpop.f32.mrb[29].mxu1 }
 0x1d1   :  { %v521_v36 = vadd.f32 %v1401_v35, %v520_v34  ;;  %v1065_v37 = vpop.f32.mrb[30].mxu1  ;;  %1106 = vmatprep.mubr.bf16.mxu0 %v635_v30 }
 0x1d2   :  { %v532_v38 = vadd.f32 %v1065_v37, %v1401_v35  ;;  %v523_v39 = vpop.f32.mrb[31].mxu1  ;;  %1107 = vmatmul.mubr.bf16.gmra.mrb[24].mxu0 %v636_v29  ;;  %v613_v41 = vmax.f32 %v529_v32, 0.0 }
 0x1d3   :  { %v524_v40 = vadd.f32 %v1401_v35, %v523_v39  ;;  %v611_v43 = vmax.f32 %v521_v36, 0.0 }
 0x1d4   :  { %v614_v42 = vmax.f32 %v532_v38, 0.0 }
 0x1d5   :  { %v612_v44 = vmax.f32 %v524_v40, 0.0  ;;  %v1435_v40 = vld [vmem:[#allocation2] ss:$0 sm:$0xff] }
 0x1d6   :  { %v638_v45 = vpack.c.bf16 %v614_v42, %v613_v41 }
 0x1d7   :  { %v637_v46 = vpack.c.bf16 %v612_v44, %v611_v43  ;;  %v1068_v47 = vpop.f32.mrb[32].mxu1 }
 0x1d8   :  { %v545_v48 = vadd.f32 %v1068_v47, %v1401_v35  ;;  %v536_v49 = vpop.f32.mrb[33].mxu1 }
 0x1d9   :  { %v537_v50 = vadd.f32 %v1401_v35, %v536_v49  ;;  %v1069_v63 = vpop.f32.mrb[34].mxu1  ;;  %1110 = vmatprep.mubr.bf16.mxu0 %v637_v46 }
 0x1da   :  { %v548_v51 = vadd.f32 %v1069_v63, %v1401_v35  ;;  %v539_v33 = vpop.f32.mrb[35].mxu1  ;;  %1111 = vmatmul.mubr.bf16.gmra.mrb[28].mxu0 %v638_v45  ;;  %v617_v53 = vmax.f32 %v545_v48, 0.0 }
 0x1db   :  { %v540_v52 = vadd.f32 %v1401_v35, %v539_v33  ;;  %v615_v55 = vmax.f32 %v537_v50, 0.0 }
 0x1dc   :  { %v618_v54 = vmax.f32 %v548_v51, 0.0 }
 0x1dd   :  { %v616_v56 = vmax.f32 %v540_v52, 0.0 }
 0x1de   :  { %v640_v57 = vpack.c.bf16 %v618_v54, %v617_v53 }
 0x1df   :  { %v639_v58 = vpack.c.bf16 %v616_v56, %v615_v55  ;;  %v1072_v59 = vpop.f32.mrb[36].mxu1 }
 0x1e0   :  { %v561_v60 = vadd.f32 %v1072_v59, %v1401_v35  ;;  %v552_v61 = vpop.f32.mrb[37].mxu1 }
 0x1e1   :  { %v553_v62 = vadd.f32 %v1401_v35, %v552_v61  ;;  %v1073_v0 = vpop.f32.mrb[38].mxu1  ;;  %1114 = vmatprep.mubr.bf16.mxu0 %v639_v58 }
 0x1e2   :  { %v564_v1 = vadd.f32 %v1073_v0, %v1401_v35  ;;  %v555_v2 = vpop.f32.mrb[39].mxu1  ;;  %1115 = vmatmul.mubr.bf16.gmra.mrb[32].mxu0 %v640_v57  ;;  %v621_v4 = vmax.f32 %v561_v60, 0.0 }
 0x1e3   :  { %v556_v3 = vadd.f32 %v1401_v35, %v555_v2  ;;  %v619_v6 = vmax.f32 %v553_v62, 0.0 }
 0x1e4   :  { %v622_v5 = vmax.f32 %v564_v1, 0.0 }
 0x1e5   :  { %v620_v7 = vmax.f32 %v556_v3, 0.0 }
 0x1e6   :  { %v642_v8 = vpack.c.bf16 %v622_v5, %v621_v4 }
 0x1e7   :  { %v641_v9 = vpack.c.bf16 %v620_v7, %v619_v6  ;;  %v1076_v10 = vpop.f32.mrb[40].mxu1 }
 0x1e8   :  { %v577_v11 = vadd.f32 %v1076_v10, %v1401_v35  ;;  %v568_v12 = vpop.f32.mrb[41].mxu1 }
 0x1e9   :  { %v569_v13 = vadd.f32 %v1401_v35, %v568_v12  ;;  %v1077_v14 = vpop.f32.mrb[42].mxu1  ;;  %1118 = vmatprep.mubr.bf16.mxu0 %v641_v9 }
 0x1ea   :  { %v580_v15 = vadd.f32 %v1077_v14, %v1401_v35  ;;  %v571_v16 = vpop.f32.mrb[43].mxu1  ;;  %1119 = vmatmul.mubr.bf16.gmra.mrb[36].mxu0 %v642_v8  ;;  %v625_v18 = vmax.f32 %v577_v11, 0.0 }
 0x1eb   :  { %v572_v17 = vadd.f32 %v1401_v35, %v571_v16  ;;  %v623_v20 = vmax.f32 %v569_v13, 0.0 }
 0x1ec   :  { %v626_v19 = vmax.f32 %v580_v15, 0.0 }
 0x1ed   :  { %v624_v21 = vmax.f32 %v572_v17, 0.0 }
 0x1ee   :  { %v644_v22 = vpack.c.bf16 %v626_v19, %v625_v18 }
 0x1ef   :  { %v643_v23 = vpack.c.bf16 %v624_v21, %v623_v20  ;;  %v1080_v24 = vpop.f32.mrb[44].mxu1 }
 0x1f0   :  { %v593_v25 = vadd.f32 %v1080_v24, %v1401_v35  ;;  %v584_v26 = vpop.f32.mrb[45].mxu1 }
 0x1f1   :  { %v585_v27 = vadd.f32 %v1401_v35, %v584_v26  ;;  %v1081_v28 = vpop.f32.mrb[46].mxu1  ;;  %1122 = vmatprep.mubr.bf16.mxu0 %v643_v23 }
 0x1f2   :  { %v596_v29 = vadd.f32 %v1081_v28, %v1401_v35  ;;  %v587_v30 = vpop.f32.mrb[47].mxu1  ;;  %1123 = vmatmul.mubr.bf16.gmra.mrb[40].mxu0 %v644_v22  ;;  %v629_v32 = vmax.f32 %v593_v25, 0.0 }
 0x1f3   :  { %v588_v31 = vadd.f32 %v1401_v35, %v587_v30  ;;  %v627_v36 = vmax.f32 %v585_v27, 0.0 }
 0x1f4   :  { %v630_v34 = vmax.f32 %v596_v29, 0.0 }
 0x1f5   :  { %v628_v37 = vmax.f32 %v588_v31, 0.0 }
 0x1f6   :  { %v646_v38 = vpack.c.bf16 %v630_v34, %v629_v32 }
 0x1f7   :  { %v645_v39 = vpack.c.bf16 %v628_v37, %v627_v36 }
 0x1f9   :  { %1126 = vmatprep.mubr.bf16.mxu0 %v645_v39 }
 0x1fa   :  { %1127 = vmatmul.mubr.bf16.gmra.mrb[44].mxu0 %v646_v38 }
 0x295   :  { %v1100_v41 = vpop.f32.mrb[16].mxu0 }
 0x296   :  { %v744_v42 = vadd.f32 %v1100_v41, %v1435_v40  ;;  %v735_v43 = vpop.f32.mrb[17].mxu0 }
 0x297   :  { %v736_v44 = vadd.f32 %v1435_v40, %v735_v43  ;;  %v1101_v45 = vpop.f32.mrb[18].mxu0 }
 0x298   :  { %865 = vst.msk [vmem:[%s1604_s7 + $0x10] sm:$0xff] %vm862_vm1, %v744_v42  ;;  %v747_v35 = vadd.f32 %v1101_v45, %v1435_v40  ;;  %v738_v46 = vpop.f32.mrb[19].mxu0 }
 0x299   :  { %863 = vst.msk [vmem:[%s1604_s7] sm:$0xff] %vm862_vm1, %v736_v44  ;;  %v739_v47 = vadd.f32 %v1435_v40, %v738_v46 }
 0x29a   :  { %866 = vst.msk [vmem:[%s1604_s7 + $0x18] sm:$0xff] %vm862_vm1, %v747_v35 }
 0x29b   :  { %864 = vst.msk [vmem:[%s1604_s7 + $0x8] sm:$0xff] %vm862_vm1, %v739_v47 }
 0x29d   :  { %v1104_v48 = vpop.f32.mrb[20].mxu0 }
 0x29e   :  { %v760_v49 = vadd.f32 %v1104_v48, %v1435_v40  ;;  %v751_v50 = vpop.f32.mrb[21].mxu0 }
 0x29f   :  { %v752_v63 = vadd.f32 %v1435_v40, %v751_v50  ;;  %v1105_v51 = vpop.f32.mrb[22].mxu0 }
 0x2a0   :  { %869 = vst.msk [vmem:[%s1604_s7 + $0x30] sm:$0xff] %vm862_vm1, %v760_v49  ;;  %v763_v33 = vadd.f32 %v1105_v51, %v1435_v40  ;;  %v754_v52 = vpop.f32.mrb[23].mxu0 }
 0x2a1   :  { %867 = vst.msk [vmem:[%s1604_s7 + $0x20] sm:$0xff] %vm862_vm1, %v752_v63  ;;  %v755_v53 = vadd.f32 %v1435_v40, %v754_v52 }
 0x2a2   :  { %870 = vst.msk [vmem:[%s1604_s7 + $0x38] sm:$0xff] %vm862_vm1, %v763_v33 }
 0x2a3   :  { %868 = vst.msk [vmem:[%s1604_s7 + $0x28] sm:$0xff] %vm862_vm1, %v755_v53 }
 0x2a5   :  { %v1108_v54 = vpop.f32.mrb[24].mxu0 }
 0x2a6   :  { %v776_v55 = vadd.f32 %v1108_v54, %v1435_v40  ;;  %v767_v56 = vpop.f32.mrb[25].mxu0 }
 0x2a7   :  { %v768_v57 = vadd.f32 %v1435_v40, %v767_v56  ;;  %v1109_v58 = vpop.f32.mrb[26].mxu0 }
 0x2a8   :  { %873 = vst.msk [vmem:[%s1604_s7 + $0x50] sm:$0xff] %vm862_vm1, %v776_v55  ;;  %v779_v59 = vadd.f32 %v1109_v58, %v1435_v40  ;;  %v770_v60 = vpop.f32.mrb[27].mxu0 }
 0x2a9   :  { %871 = vst.msk [vmem:[%s1604_s7 + $0x40] sm:$0xff] %vm862_vm1, %v768_v57  ;;  %v771_v61 = vadd.f32 %v1435_v40, %v770_v60 }
 0x2aa   :  { %874 = vst.msk [vmem:[%s1604_s7 + $0x58] sm:$0xff] %vm862_vm1, %v779_v59 }
 0x2ab   :  { %872 = vst.msk [vmem:[%s1604_s7 + $0x48] sm:$0xff] %vm862_vm1, %v771_v61 }
 0x2ad   :  { %v1112_v62 = vpop.f32.mrb[28].mxu0 }
 0x2ae   :  { %v792_v0 = vadd.f32 %v1112_v62, %v1435_v40  ;;  %v783_v1 = vpop.f32.mrb[29].mxu0 }
 0x2af   :  { %v784_v2 = vadd.f32 %v1435_v40, %v783_v1  ;;  %v1113_v3 = vpop.f32.mrb[30].mxu0 }
 0x2b0   :  { %877 = vst.msk [vmem:[%s1604_s7 + $0x70] sm:$0xff] %vm862_vm1, %v792_v0  ;;  %v795_v4 = vadd.f32 %v1113_v3, %v1435_v40  ;;  %v786_v5 = vpop.f32.mrb[31].mxu0 }
 0x2b1   :  { %875 = vst.msk [vmem:[%s1604_s7 + $0x60] sm:$0xff] %vm862_vm1, %v784_v2  ;;  %v787_v6 = vadd.f32 %v1435_v40, %v786_v5 }
 0x2b2   :  { %878 = vst.msk [vmem:[%s1604_s7 + $0x78] sm:$0xff] %vm862_vm1, %v795_v4 }
 0x2b3   :  { %876 = vst.msk [vmem:[%s1604_s7 + $0x68] sm:$0xff] %vm862_vm1, %v787_v6 }
 0x2b5   :  { %v1116_v7 = vpop.f32.mrb[32].mxu0 }
 0x2b6   :  { %v808_v8 = vadd.f32 %v1116_v7, %v1435_v40  ;;  %v799_v9 = vpop.f32.mrb[33].mxu0 }
 0x2b7   :  { %v800_v10 = vadd.f32 %v1435_v40, %v799_v9  ;;  %v1117_v11 = vpop.f32.mrb[34].mxu0 }
 0x2b8   :  { %881 = vst.msk [vmem:[%s1604_s7 + $0x90] sm:$0xff] %vm862_vm1, %v808_v8  ;;  %v811_v12 = vadd.f32 %v1117_v11, %v1435_v40  ;;  %v802_v13 = vpop.f32.mrb[35].mxu0 }
 0x2b9   :  { %879 = vst.msk [vmem:[%s1604_s7 + $0x80] sm:$0xff] %vm862_vm1, %v800_v10  ;;  %v803_v14 = vadd.f32 %v1435_v40, %v802_v13 }
 0x2ba   :  { %882 = vst.msk [vmem:[%s1604_s7 + $0x98] sm:$0xff] %vm862_vm1, %v811_v12 }
 0x2bb   :  { %880 = vst.msk [vmem:[%s1604_s7 + $0x88] sm:$0xff] %vm862_vm1, %v803_v14 }
 0x2bd   :  { %v1120_v15 = vpop.f32.mrb[36].mxu0 }
 0x2be   :  { %v824_v16 = vadd.f32 %v1120_v15, %v1435_v40  ;;  %v815_v17 = vpop.f32.mrb[37].mxu0 }
 0x2bf   :  { %v816_v18 = vadd.f32 %v1435_v40, %v815_v17  ;;  %v1121_v19 = vpop.f32.mrb[38].mxu0 }
 0x2c0   :  { %885 = vst.msk [vmem:[%s1604_s7 + $0xb0] sm:$0xff] %vm862_vm1, %v824_v16  ;;  %v827_v20 = vadd.f32 %v1121_v19, %v1435_v40  ;;  %v818_v21 = vpop.f32.mrb[39].mxu0 }
 0x2c1   :  { %883 = vst.msk [vmem:[%s1604_s7 + $0xa0] sm:$0xff] %vm862_vm1, %v816_v18  ;;  %v819_v22 = vadd.f32 %v1435_v40, %v818_v21 }
 0x2c2   :  { %886 = vst.msk [vmem:[%s1604_s7 + $0xb8] sm:$0xff] %vm862_vm1, %v827_v20 }
 0x2c3   :  { %884 = vst.msk [vmem:[%s1604_s7 + $0xa8] sm:$0xff] %vm862_vm1, %v819_v22 }
 0x2c5   :  { %v1124_v23 = vpop.f32.mrb[40].mxu0 }
 0x2c6   :  { %v840_v24 = vadd.f32 %v1124_v23, %v1435_v40  ;;  %v831_v25 = vpop.f32.mrb[41].mxu0 }
 0x2c7   :  { %v832_v26 = vadd.f32 %v1435_v40, %v831_v25  ;;  %v1125_v27 = vpop.f32.mrb[42].mxu0 }
 0x2c8   :  { %889 = vst.msk [vmem:[%s1604_s7 + $0xd0] sm:$0xff] %vm862_vm1, %v840_v24  ;;  %v843_v28 = vadd.f32 %v1125_v27, %v1435_v40  ;;  %v834_v29 = vpop.f32.mrb[43].mxu0 }
 0x2c9   :  { %887 = vst.msk [vmem:[%s1604_s7 + $0xc0] sm:$0xff] %vm862_vm1, %v832_v26  ;;  %v835_v30 = vadd.f32 %v1435_v40, %v834_v29 }
 0x2ca   :  { %890 = vst.msk [vmem:[%s1604_s7 + $0xd8] sm:$0xff] %vm862_vm1, %v843_v28 }
 0x2cb   :  { %888 = vst.msk [vmem:[%s1604_s7 + $0xc8] sm:$0xff] %vm862_vm1, %v835_v30 }
 0x2cd   :  { %v1128_v31 = vpop.f32.mrb[44].mxu0 }
 0x2ce   :  { %v856_v32 = vadd.f32 %v1128_v31, %v1435_v40  ;;  %v847_v34 = vpop.f32.mrb[45].mxu0 }
 0x2cf   :  { %v848_v36 = vadd.f32 %v1435_v40, %v847_v34  ;;  %v1129_v37 = vpop.f32.mrb[46].mxu0 }
 0x2d0   :  { %893 = vst.msk [vmem:[%s1604_s7 + $0xf0] sm:$0xff] %vm862_vm1, %v856_v32  ;;  %v859_v38 = vadd.f32 %v1129_v37, %v1435_v40  ;;  %v850_v39 = vpop.f32.mrb[47].mxu0 }
 0x2d1   :  { %891 = vst.msk [vmem:[%s1604_s7 + $0xe0] sm:$0xff] %vm862_vm1, %v848_v36  ;;  %v851_v41 = vadd.f32 %v1435_v40, %v850_v39 }
 0x2d2   :  { %894 = vst.msk [vmem:[%s1604_s7 + $0xf8] sm:$0xff] %vm862_vm1, %v859_v38 }
 0x2d3   :  { %892 = vst.msk [vmem:[%s1604_s7 + $0xe8] sm:$0xff] %vm862_vm1, %v851_v41 }

</bundles_post_ra>
